<compile_context>
chip_gen: v7x
topology: tpu7x:2x2x1
jax: 0.10.0
libtpu: 0.0.40
codegen_flags: <defaults>
</compile_context>

<pallas_src>
import jax
import jax.numpy as jnp
from jax import lax
from jax.experimental import pallas as pl
from jax.experimental.pallas import tpu as pltpu


def _round_up(x, m):
    return (x + m - 1) // m * m


def _pick_tile_units(total_units, max_units, min_steps=1):
    """Largest d (in 128-row units) dividing total_units with d <= max_units
    and total_units // d >= min_steps. Falls back to 1."""
    hi = max(1, min(total_units, max_units))
    for d in range(hi, 0, -1):
        if total_units % d == 0 and total_units // d >= min_steps:
            return d
    return 1


# -----------------------------------------------------------------------------
# Phase 1 kernel: per-row-tile MLP head.
# -----------------------------------------------------------------------------
def _mlp_head_kernel(x_ref, w1_ref, b1_ref, g_ref, be_ref, w2_ref, b2_ref,
                     wc_ref, bc_ref, zn_ref, znT_ref, logits_ref):
    # fc1 (MXU; operands may be bf16, accumulation is f32)
    h = jnp.dot(x_ref[...], w1_ref[...],
                preferred_element_type=jnp.float32) + b1_ref[...]

    # exact (erf-based) gelu == torch.nn.functional.gelu default
    h = 0.5 * h * (1.0 + lax.erf(h * 0.7071067811865475))

    # LayerNorm(nhid, eps=1e-6), two-pass statistics (numerically safer)
    mu = jnp.mean(h, axis=-1, keepdims=True)
    hc = h - mu
    var = jnp.mean(hc * hc, axis=-1, keepdims=True)
    hn = hc * lax.rsqrt(var + 1e-6) * g_ref[...] + be_ref[...]

    # TODO(synk): stochastic dropout (p>0 in training) would need pltpu.prng_*;
    # the module is exercised with dropout probability 0 -> identity.

    # fc2
    z = jnp.dot(hn.astype(w2_ref.dtype), w2_ref[...],
                preferred_element_type=jnp.float32) + b2_ref[...]

    # Pre-normalize z so the N^2 Gram phase is a single plain matmul (kills the
    # per-tile transpose, sqrt and N^2 reciprocal of the reference form).
    ss = jnp.sum(z * z, axis=-1, keepdims=True)
    znf = z * lax.rsqrt(jnp.maximum(ss, 1e-30))
    zn_ref[...] = znf.astype(zn_ref.dtype)
    # one transpose per row tile (instead of one per Phase-2 (i,j) tile)
    znT_ref[...] = znf.T.astype(znT_ref.dtype)

    # classifier -> log_softmax.  wc/bc are lane-padded to a multiple of 128;
    # padded columns carry bias -1e30 so exp() underflows to exactly 0 and the
    # real-column log_softmax is unchanged.
    cf = jnp.dot(z.astype(wc_ref.dtype), wc_ref[...],
                 preferred_element_type=jnp.float32) + bc_ref[...]
    m = jnp.max(cf, axis=-1, keepdims=True)
    s = cf - m
    lse = jnp.log(jnp.sum(jnp.exp(s), axis=-1, keepdims=True))
    logits_ref[...] = s - lse


# -----------------------------------------------------------------------------
# Phase 2 kernel: (i, j) tile of x_dis = (1 - mask) * (zn @ zn.T)
# -----------------------------------------------------------------------------
def _feature_dis_kernel(zni_ref, znTj_ref, mask_ref, out_ref):
    g = jnp.dot(zni_ref[...], znTj_ref[...],
                preferred_element_type=jnp.float32)
    out_ref[...] = ((1.0 - mask_ref[...].astype(jnp.float32)) * g
                    ).astype(out_ref.dtype)


# -----------------------------------------------------------------------------
# Wrapper
# -----------------------------------------------------------------------------
def gmlp_forward(x, mask, params, *, use_bf16=True, row_tile=1024,
                 dis_tile=1024, dis_dtype=jnp.float32):
    """Training-mode GMLP forward.

    Returns (class_logits [N, nclass], x_dis [N, N]).

    dis_tile: Phase-2 tile cap. 1024 is safe on every generation (v7x has only
      64 MiB VMEM/TC); 2048 is permissible on v5e/v6e (128 MiB) for a small
      extra win.
    dis_dtype: x_dis output dtype. jnp.bfloat16 halves the dominant O(N^2)
      writeback traffic if the caller's tolerance allows.
    """
    N, nfeat = x.shape
    nhid = params["w1"].shape[1]
    nclass = params["wc"].shape[1]

    f32 = jnp.float32
    mm_dtype = jnp.bfloat16 if use_bf16 else f32

    # Row padding only to the 128-row layout granule (NOT to a td multiple);
    # tiles are the largest 128-multiples that evenly divide Np.
    Np = _round_up(N, 128)
    m_units = Np // 128
    td = 128 * _pick_tile_units(m_units, max(1, dis_tile // 128), min_steps=1)
    # keep >=2 Phase-1 grid steps where possible so v7x's 2 TCs both get work
    tm = 128 * _pick_tile_units(m_units, max(1, row_tile // 128),
                                min_steps=2 if m_units >= 2 else 1)

    nfp = _round_up(nfeat, 128)   # lane-dense x / full-width fc1 contraction
    ncp = _round_up(nclass, 128)  # lane-dense logits width

    # ---------------- host-side packing ----------------
    xp = x.astype(mm_dtype)
    if nfp != nfeat:
        xp = jnp.pad(xp, ((0, 0), (0, nfp - nfeat)))
    if Np != N:
        xp = jnp.pad(xp, ((0, Np - N), (0, 0)))

    # binary adjacency masks travel as int8 (4x less O(N^2) DMA); float masks
    # keep their dtype (cast in-kernel) so non-binary semantics are preserved.
    if (jnp.issubdtype(mask.dtype, jnp.bool_)
            or jnp.issubdtype(mask.dtype, jnp.integer)):
        mask = mask.astype(jnp.int8)
    if Np != N:
        mask = jnp.pad(mask, ((0, Np - N), (0, Np - N)))

    w1 = params["w1"].astype(mm_dtype)
    if nfp != nfeat:
        w1 = jnp.pad(w1, ((0, nfp - nfeat), (0, 0)))
    w2 = params["w2"].astype(mm_dtype)
    wc = jnp.pad(params["wc"], ((0, 0), (0, ncp - nclass))).astype(mm_dtype)
    bc = jnp.pad(params["bc"].astype(f32), ((0, 0), (0, ncp - nclass)),
                 constant_values=-1e30)
    b1 = params["b1"].astype(f32)
    b2 = params["b2"].astype(f32)
    ln_g = params["ln_g"].astype(f32)
    ln_b = params["ln_b"].astype(f32)

    mm_bytes = 2 if use_bf16 else 4
    dis_bytes = jnp.dtype(dis_dtype).itemsize

    # ---------------- Phase 1: row-tiled MLP head ----------------
    bytes1 = int(xp.size * xp.dtype.itemsize
                 + (w1.size + w2.size + wc.size) * mm_bytes
                 + (b1.size + b2.size + ln_g.size + ln_b.size + bc.size) * 4
                 + 2 * Np * nhid * mm_bytes        # zn + znT
                 + Np * ncp * 4)                   # logits
    cost1 = pl.CostEstimate(
        flops=2 * Np * nhid * (nfp + nhid + ncp),
        transcendentals=Np * (nhid + ncp),
        bytes_accessed=bytes1)

    zn, znT, logits_p = pl.pallas_call(
        _mlp_head_kernel,
        out_shape=(jax.ShapeDtypeStruct((Np, nhid), mm_dtype),
                   jax.ShapeDtypeStruct((nhid, Np), mm_dtype),
                   jax.ShapeDtypeStruct((Np, ncp), f32)),
        grid=(Np // tm,),
        in_specs=[
            pl.BlockSpec((tm, nfp), lambda i: (i, 0)),      # x rows
            pl.BlockSpec((nfp, nhid), lambda i: (0, 0)),    # w1 (resident)
            pl.BlockSpec((1, nhid), lambda i: (0, 0)),      # b1
            pl.BlockSpec((1, nhid), lambda i: (0, 0)),      # ln gamma
            pl.BlockSpec((1, nhid), lambda i: (0, 0)),      # ln beta
            pl.BlockSpec((nhid, nhid), lambda i: (0, 0)),   # w2
            pl.BlockSpec((1, nhid), lambda i: (0, 0)),      # b2
            pl.BlockSpec((nhid, ncp), lambda i: (0, 0)),    # wc (lane-padded)
            pl.BlockSpec((1, ncp), lambda i: (0, 0)),       # bc (lane-padded)
        ],
        out_specs=(pl.BlockSpec((tm, nhid), lambda i: (i, 0)),
                   pl.BlockSpec((nhid, tm), lambda i: (0, i)),
                   pl.BlockSpec((tm, ncp), lambda i: (i, 0))),
        compiler_params=pltpu.CompilerParams(
            dimension_semantics=("parallel",),
            vmem_limit_bytes=32 * 1024 * 1024),
        cost_estimate=cost1,
    )(xp, w1, b1, ln_g, ln_b, w2, b2, wc, bc)

    # ---------------- Phase 2: (i, j)-tiled Gram / x_dis ----------------
    nj = Np // td
    bytes2 = int(mask.size * mask.dtype.itemsize        # mask stream
                 + Np * Np * dis_bytes                  # x_dis stream
                 + 2 * nj * Np * nhid * mm_bytes)       # zn / znT re-reads
    cost2 = pl.CostEstimate(
        flops=2 * Np * Np * nhid + 3 * Np * Np,
        transcendentals=0,
        bytes_accessed=bytes2)

    x_dis_p = pl.pallas_call(
        _feature_dis_kernel,
        out_shape=jax.ShapeDtypeStruct((Np, Np), dis_dtype),
        grid=(nj, nj),
        in_specs=[
            pl.BlockSpec((td, nhid), lambda i, j: (i, 0)),   # zn_i
            pl.BlockSpec((nhid, td), lambda i, j: (0, j)),   # znT_j (no in-loop transpose)
            pl.BlockSpec((td, td), lambda i, j: (i, j)),     # mask tile (int8 ok)
        ],
        out_specs=pl.BlockSpec((td, td), lambda i, j: (i, j)),
        compiler_params=pltpu.CompilerParams(
            dimension_semantics=("parallel", "parallel"),
            vmem_limit_bytes=48 * 1024 * 1024),
        cost_estimate=cost2,
    )(zn, znT, mask)

    # strip row padding and classifier lane padding
    return logits_p[:N, :nclass], x_dis_p[:N, :N]


# -----------------------------------------------------------------------------
# Parameter init (mirrors the PyTorch module's _init_weights / defaults)
# -----------------------------------------------------------------------------
def init_params(key, nfeat, nhid, nclass):
    ks = jax.random.split(key, 6)

    def xavier(k, fan_in, fan_out):
        lim = jnp.sqrt(6.0 / (fan_in + fan_out))
        return jax.random.uniform(k, (fan_in, fan_out), jnp.float32, -lim, lim)

    return {
        # Mlp.fc1 / fc2 : xavier_uniform weights, normal(std=1e-6) biases
        "w1": xavier(ks[0], nfeat, nhid),
        "b1": (1e-6 * jax.random.normal(ks[1], (1, nhid))).astype(jnp.float32),
        "w2": xavier(ks[2], nhid, nhid),
        "b2": (1e-6 * jax.random.normal(ks[3], (1, nhid))).astype(jnp.float32),
        # LayerNorm affine params (PyTorch default: gamma=1, beta=0)
        "ln_g": jnp.ones((1, nhid), jnp.float32),
        "ln_b": jnp.zeros((1, nhid), jnp.float32),
        # classifier Linear (uniform init with PyTorch-default-like bound)
        "wc": jax.random.uniform(ks[4], (nhid, nclass), jnp.float32,
                                 -1.0 / jnp.sqrt(nhid), 1.0 / jnp.sqrt(nhid)),
        "bc": jax.random.uniform(ks[5], (1, nclass), jnp.float32,
                                 -1.0 / jnp.sqrt(nhid), 1.0 / jnp.sqrt(nhid)),
    }


if __name__ == "__main__":
    # Small but tiling-exercising shapes: N not a power-of-two tile, nfeat not
    # a multiple of 128, nclass not a multiple of 128 -> exercises row padding,
    # feature lane-padding and lane-dense logit padding.
    N, nfeat, nhid, nclass = 384, 96, 128, 7
    key = jax.random.PRNGKey(0)
    kx, km, kp = jax.random.split(key, 3)

    x = jax.random.normal(kx, (N, nfeat), jnp.float32)
    # binary adjacency-style mask (bool -> cast to int8 inside the wrapper)
    mask = jax.random.uniform(km, (N, N)) > 0.5
    params = init_params(kp, nfeat, nhid, nclass)

    class_logits, x_dis = gmlp_forward(x, mask, params)
    jax.block_until_ready((class_logits, x_dis))

    assert class_logits.shape == (N, nclass) and x_dis.shape == (N, N)
    assert bool(jnp.all(jnp.isfinite(class_logits)))
    assert bool(jnp.all(jnp.isfinite(x_dis)))
    print("KERNEL_OK")
</pallas_src>

<mosaic_0001>
module attributes {stable_mosaic.version = 11 : i64} {
  func.func @_mlp_head_kernel(%arg0: i32, %arg1: memref<128x128xbf16, #tpu.memory_space<vmem>>, %arg2: memref<128x128xbf16, #tpu.memory_space<vmem>>, %arg3: memref<1x128xf32, #tpu.memory_space<vmem>>, %arg4: memref<1x128xf32, #tpu.memory_space<vmem>>, %arg5: memref<1x128xf32, #tpu.memory_space<vmem>>, %arg6: memref<128x128xbf16, #tpu.memory_space<vmem>>, %arg7: memref<1x128xf32, #tpu.memory_space<vmem>>, %arg8: memref<128x128xbf16, #tpu.memory_space<vmem>>, %arg9: memref<1x128xf32, #tpu.memory_space<vmem>>, %arg10: memref<128x128xbf16, #tpu.memory_space<vmem>>, %arg11: memref<128x128xbf16, #tpu.memory_space<vmem>>, %arg12: memref<128x128xf32, #tpu.memory_space<vmem>>) attributes {dimension_semantics = [#tpu.dimension_semantics<parallel>], iteration_bounds = array<i64: 3>, scalar_prefetch = 0 : i64, scratch_operands = 0 : i64, tpu.core_type = #tpu.core_type<tc>, window_params = [{transform_indices = @transform_0, window_bounds = array<i64: 128, 128>}, {pipeline_mode = #tpu.pipeline_mode<synchronous>, transform_indices = @transform_1, window_bounds = array<i64: 128, 128>}, {pipeline_mode = #tpu.pipeline_mode<synchronous>, transform_indices = @transform_2, window_bounds = array<i64: 1, 128>}, {pipeline_mode = #tpu.pipeline_mode<synchronous>, transform_indices = @transform_3, window_bounds = array<i64: 1, 128>}, {pipeline_mode = #tpu.pipeline_mode<synchronous>, transform_indices = @transform_4, window_bounds = array<i64: 1, 128>}, {pipeline_mode = #tpu.pipeline_mode<synchronous>, transform_indices = @transform_5, window_bounds = array<i64: 128, 128>}, {pipeline_mode = #tpu.pipeline_mode<synchronous>, transform_indices = @transform_6, window_bounds = array<i64: 1, 128>}, {pipeline_mode = #tpu.pipeline_mode<synchronous>, transform_indices = @transform_7, window_bounds = array<i64: 128, 128>}, {pipeline_mode = #tpu.pipeline_mode<synchronous>, transform_indices = @transform_8, window_bounds = array<i64: 1, 128>}, {transform_indices = @transform_9, window_bounds = array<i64: 128, 128>}, {transform_indices = @transform_10, window_bounds = array<i64: 128, 128>}, {transform_indices = @transform_11, window_bounds = array<i64: 128, 128>}]} {
    %c0 = arith.constant 0 : index
    %c0_0 = arith.constant 0 : index
    %0 = vector.load %arg1[%c0, %c0_0] : memref<128x128xbf16, #tpu.memory_space<vmem>>, vector<128x128xbf16>
    %c0_1 = arith.constant 0 : index
    %c0_2 = arith.constant 0 : index
    %1 = vector.load %arg2[%c0_1, %c0_2] : memref<128x128xbf16, #tpu.memory_space<vmem>>, vector<128x128xbf16>
    %cst = arith.constant dense<0.000000e+00> : vector<128x128xf32>
    %2 = tpu.matmul %0, %1, %cst {dimension_numbers = #tpu.dot_dimension_numbers<[1], [0], [0], [1], [0, 0, 1, 1], [], []>} : vector<128x128xbf16>, vector<128x128xbf16>, vector<128x128xf32> -> vector<128x128xf32>
    %c0_3 = arith.constant 0 : index
    %c0_4 = arith.constant 0 : index
    %3 = vector.load %arg3[%c0_3, %c0_4] : memref<1x128xf32, #tpu.memory_space<vmem>>, vector<1x128xf32>
    %4 = vector.broadcast %3 : vector<1x128xf32> to vector<128x128xf32>
    %5 = arith.addf %2, %4 : vector<128x128xf32>
    %cst_5 = arith.constant 5.000000e-01 : f32
    %6 = vector.broadcast %cst_5 : f32 to vector<128x128xf32>
    %7 = arith.mulf %6, %5 : vector<128x128xf32>
    %cst_6 = arith.constant 0.707106769 : f32
    %8 = vector.broadcast %cst_6 : f32 to vector<128x128xf32>
    %9 = arith.mulf %5, %8 : vector<128x128xf32>
    %10 = math.erf %9 : vector<128x128xf32>
    %cst_7 = arith.constant 1.000000e+00 : f32
    %11 = vector.broadcast %cst_7 : f32 to vector<128x128xf32>
    %12 = arith.addf %11, %10 : vector<128x128xf32>
    %13 = arith.mulf %7, %12 : vector<128x128xf32>
    %cst_8 = arith.constant dense<0.000000e+00> : vector<128xf32>
    %14 = vector.multi_reduction <add>, %13, %cst_8 [1] : vector<128x128xf32> to vector<128xf32>
    %15 = vector.shape_cast %14 : vector<128xf32> to vector<128x1xf32>
    %cst_9 = arith.constant 1.280000e+02 : f32
    %16 = vector.broadcast %cst_9 : f32 to vector<128x1xf32>
    %17 = arith.divf %15, %16 : vector<128x1xf32>
    %18 = vector.broadcast %17 : vector<128x1xf32> to vector<128x128xf32>
    %19 = arith.subf %13, %18 : vector<128x128xf32>
    %20 = arith.mulf %19, %19 : vector<128x128xf32>
    %cst_10 = arith.constant dense<0.000000e+00> : vector<128xf32>
    %21 = vector.multi_reduction <add>, %20, %cst_10 [1] : vector<128x128xf32> to vector<128xf32>
    %22 = vector.shape_cast %21 : vector<128xf32> to vector<128x1xf32>
    %cst_11 = arith.constant 1.280000e+02 : f32
    %23 = vector.broadcast %cst_11 : f32 to vector<128x1xf32>
    %24 = arith.divf %22, %23 : vector<128x1xf32>
    %cst_12 = arith.constant 9.99999997E-7 : f32
    %25 = vector.broadcast %cst_12 : f32 to vector<128x1xf32>
    %26 = arith.addf %24, %25 : vector<128x1xf32>
    %27 = math.rsqrt %26 : vector<128x1xf32>
    %28 = vector.broadcast %27 : vector<128x1xf32> to vector<128x128xf32>
    %29 = arith.mulf %19, %28 : vector<128x128xf32>
    %c0_13 = arith.constant 0 : index
    %c0_14 = arith.constant 0 : index
    %30 = vector.load %arg4[%c0_13, %c0_14] : memref<1x128xf32, #tpu.memory_space<vmem>>, vector<1x128xf32>
    %31 = vector.broadcast %30 : vector<1x128xf32> to vector<128x128xf32>
    %32 = arith.mulf %29, %31 : vector<128x128xf32>
    %c0_15 = arith.constant 0 : index
    %c0_16 = arith.constant 0 : index
    %33 = vector.load %arg5[%c0_15, %c0_16] : memref<1x128xf32, #tpu.memory_space<vmem>>, vector<1x128xf32>
    %34 = vector.broadcast %33 : vector<1x128xf32> to vector<128x128xf32>
    %35 = arith.addf %32, %34 : vector<128x128xf32>
    %36 = arith.truncf %35 : vector<128x128xf32> to vector<128x128xbf16>
    %c0_17 = arith.constant 0 : index
    %c0_18 = arith.constant 0 : index
    %37 = vector.load %arg6[%c0_17, %c0_18] : memref<128x128xbf16, #tpu.memory_space<vmem>>, vector<128x128xbf16>
    %cst_19 = arith.constant dense<0.000000e+00> : vector<128x128xf32>
    %38 = tpu.matmul %36, %37, %cst_19 {dimension_numbers = #tpu.dot_dimension_numbers<[1], [0], [0], [1], [0, 0, 1, 1], [], []>} : vector<128x128xbf16>, vector<128x128xbf16>, vector<128x128xf32> -> vector<128x128xf32>
    %c0_20 = arith.constant 0 : index
    %c0_21 = arith.constant 0 : index
    %39 = vector.load %arg7[%c0_20, %c0_21] : memref<1x128xf32, #tpu.memory_space<vmem>>, vector<1x128xf32>
    %40 = vector.broadcast %39 : vector<1x128xf32> to vector<128x128xf32>
    %41 = arith.addf %38, %40 : vector<128x128xf32>
    %42 = arith.mulf %41, %41 : vector<128x128xf32>
    %cst_22 = arith.constant dense<0.000000e+00> : vector<128xf32>
    %43 = vector.multi_reduction <add>, %42, %cst_22 [1] : vector<128x128xf32> to vector<128xf32>
    %44 = vector.shape_cast %43 : vector<128xf32> to vector<128x1xf32>
    %cst_23 = arith.constant 1.000000e-30 : f32
    %45 = vector.broadcast %cst_23 : f32 to vector<128x1xf32>
    %46 = arith.maximumf %44, %45 : vector<128x1xf32>
    %47 = math.rsqrt %46 : vector<128x1xf32>
    %48 = vector.broadcast %47 : vector<128x1xf32> to vector<128x128xf32>
    %49 = arith.mulf %41, %48 : vector<128x128xf32>
    %50 = arith.truncf %49 : vector<128x128xf32> to vector<128x128xbf16>
    %c0_24 = arith.constant 0 : index
    %c0_25 = arith.constant 0 : index
    %51 = vector.load %arg10[%c0_24, %c0_25] : memref<128x128xbf16, #tpu.memory_space<vmem>>, vector<128x128xbf16>
    tpu.vector_store %arg10[%c0_24, %c0_25], %50 {strides = array<i32>} : memref<128x128xbf16, #tpu.memory_space<vmem>>, vector<128x128xbf16>,
    %52 = tpu.transpose %49, [1, 0] : vector<128x128xf32> -> vector<128x128xf32>
    %53 = arith.truncf %52 : vector<128x128xf32> to vector<128x128xbf16>
    %c0_26 = arith.constant 0 : index
    %c0_27 = arith.constant 0 : index
    %54 = vector.load %arg11[%c0_26, %c0_27] : memref<128x128xbf16, #tpu.memory_space<vmem>>, vector<128x128xbf16>
    tpu.vector_store %arg11[%c0_26, %c0_27], %53 {strides = array<i32>} : memref<128x128xbf16, #tpu.memory_space<vmem>>, vector<128x128xbf16>,
    %55 = arith.truncf %41 : vector<128x128xf32> to vector<128x128xbf16>
    %c0_28 = arith.constant 0 : index
    %c0_29 = arith.constant 0 : index
    %56 = vector.load %arg8[%c0_28, %c0_29] : memref<128x128xbf16, #tpu.memory_space<vmem>>, vector<128x128xbf16>
    %cst_30 = arith.constant dense<0.000000e+00> : vector<128x128xf32>
    %57 = tpu.matmul %55, %56, %cst_30 {dimension_numbers = #tpu.dot_dimension_numbers<[1], [0], [0], [1], [0, 0, 1, 1], [], []>} : vector<128x128xbf16>, vector<128x128xbf16>, vector<128x128xf32> -> vector<128x128xf32>
    %c0_31 = arith.constant 0 : index
    %c0_32 = arith.constant 0 : index
    %58 = vector.load %arg9[%c0_31, %c0_32] : memref<1x128xf32, #tpu.memory_space<vmem>>, vector<1x128xf32>
    %59 = vector.broadcast %58 : vector<1x128xf32> to vector<128x128xf32>
    %60 = arith.addf %57, %59 : vector<128x128xf32>
    %cst_33 = arith.constant dense<0xFF800000> : vector<128xf32>
    %61 = vector.multi_reduction <maximumf>, %60, %cst_33 [1] : vector<128x128xf32> to vector<128xf32>
    %62 = vector.shape_cast %61 : vector<128xf32> to vector<128x1xf32>
    %63 = vector.broadcast %62 : vector<128x1xf32> to vector<128x128xf32>
    %64 = arith.subf %60, %63 : vector<128x128xf32>
    %65 = math.exp %64 : vector<128x128xf32>
    %cst_34 = arith.constant dense<0.000000e+00> : vector<128xf32>
    %66 = vector.multi_reduction <add>, %65, %cst_34 [1] : vector<128x128xf32> to vector<128xf32>
    %67 = vector.shape_cast %66 : vector<128xf32> to vector<128x1xf32>
    %68 = math.log %67 : vector<128x1xf32>
    %69 = vector.broadcast %68 : vector<128x1xf32> to vector<128x128xf32>
    %70 = arith.subf %64, %69 : vector<128x128xf32>
    %c0_35 = arith.constant 0 : index
    %c0_36 = arith.constant 0 : index
    %71 = vector.load %arg12[%c0_35, %c0_36] : memref<128x128xf32, #tpu.memory_space<vmem>>, vector<128x128xf32>
    tpu.vector_store %arg12[%c0_35, %c0_36], %70 {strides = array<i32>} : memref<128x128xf32, #tpu.memory_space<vmem>>, vector<128x128xf32>,
    return
  }
  func.func @transform_0(%arg0: i32) -> (i32, i32) {
    %c0_i32 = arith.constant 0 : i32
    %c0_i32_0 = arith.constant 0 : i32
    return %arg0, %c0_i32 : i32, i32
  }
  func.func @transform_1(%arg0: i32) -> (i32, i32) {
    %c0_i32 = arith.constant 0 : i32
    %c0_i32_0 = arith.constant 0 : i32
    %c0_i32_1 = arith.constant 0 : i32
    return %c0_i32, %c0_i32_0 : i32, i32
  }
  func.func @transform_2(%arg0: i32) -> (i32, i32) {
    %c0_i32 = arith.constant 0 : i32
    %c0_i32_0 = arith.constant 0 : i32
    %c0_i32_1 = arith.constant 0 : i32
    return %c0_i32, %c0_i32_0 : i32, i32
  }
  func.func @transform_3(%arg0: i32) -> (i32, i32) {
    %c0_i32 = arith.constant 0 : i32
    %c0_i32_0 = arith.constant 0 : i32
    %c0_i32_1 = arith.constant 0 : i32
    return %c0_i32, %c0_i32_0 : i32, i32
  }
  func.func @transform_4(%arg0: i32) -> (i32, i32) {
    %c0_i32 = arith.constant 0 : i32
    %c0_i32_0 = arith.constant 0 : i32
    %c0_i32_1 = arith.constant 0 : i32
    return %c0_i32, %c0_i32_0 : i32, i32
  }
  func.func @transform_5(%arg0: i32) -> (i32, i32) {
    %c0_i32 = arith.constant 0 : i32
    %c0_i32_0 = arith.constant 0 : i32
    %c0_i32_1 = arith.constant 0 : i32
    return %c0_i32, %c0_i32_0 : i32, i32
  }
  func.func @transform_6(%arg0: i32) -> (i32, i32) {
    %c0_i32 = arith.constant 0 : i32
    %c0_i32_0 = arith.constant 0 : i32
    %c0_i32_1 = arith.constant 0 : i32
    return %c0_i32, %c0_i32_0 : i32, i32
  }
  func.func @transform_7(%arg0: i32) -> (i32, i32) {
    %c0_i32 = arith.constant 0 : i32
    %c0_i32_0 = arith.constant 0 : i32
    %c0_i32_1 = arith.constant 0 : i32
    return %c0_i32, %c0_i32_0 : i32, i32
  }
  func.func @transform_8(%arg0: i32) -> (i32, i32) {
    %c0_i32 = arith.constant 0 : i32
    %c0_i32_0 = arith.constant 0 : i32
    %c0_i32_1 = arith.constant 0 : i32
    return %c0_i32, %c0_i32_0 : i32, i32
  }
  func.func @transform_9(%arg0: i32) -> (i32, i32) {
    %c0_i32 = arith.constant 0 : i32
    %c0_i32_0 = arith.constant 0 : i32
    return %arg0, %c0_i32 : i32, i32
  }
  func.func @transform_10(%arg0: i32) -> (i32, i32) {
    %c0_i32 = arith.constant 0 : i32
    %c0_i32_0 = arith.constant 0 : i32
    return %c0_i32, %arg0 : i32, i32
  }
  func.func @transform_11(%arg0: i32) -> (i32, i32) {
    %c0_i32 = arith.constant 0 : i32
    %c0_i32_0 = arith.constant 0 : i32
    return %arg0, %c0_i32 : i32, i32
  }
}

</mosaic_0001>

<bundles_post_ra>
// kernel: tpu_custom_call.1
= control target key start
LH: loop header
LB: loop body
LE: loop exit
PB: predicated region body
PF: predicated region fallthrough
CT: control target
= control target key end

     0   :  { %s3959_s0 = inlined_call_operand.hbm [shape: bf16[384,128], index: 0, kind: input, shape index: {}]   ;;  %s3960_s1 = inlined_call_operand.hbm [shape: bf16[128,128], index: 1, kind: input, shape index: {}]   ;;  %s3961_s2 = inlined_call_operand.vmem [shape: f32[1,128], index: 2, kind: input, shape index: {}]   ;;  %s3962_s3 = inlined_call_operand.vmem [shape: f32[1,128], index: 3, kind: input, shape index: {}]   ;;  %s3963_s4 = inlined_call_operand.vmem [shape: f32[1,128], index: 4, kind: input, shape index: {}]   ;;  %s3964_s5 = inlined_call_operand.hbm [shape: bf16[128,128], index: 5, kind: input, shape index: {}]   ;;  %s3965_s6 = inlined_call_operand.vmem [shape: f32[1,128], index: 6, kind: input, shape index: {}]   ;;  %s3966_s7 = inlined_call_operand.hbm [shape: bf16[128,128], index: 7, kind: input, shape index: {}]   ;;  %s3967_s8 = inlined_call_operand.vmem [shape: f32[1,128], index: 8, kind: input, shape index: {}]   ;;  %s3968_s9 = inlined_call_operand.hbm [shape: bf16[384,128], index: 9, kind: output, shape index: {0}]   ;;  %s3969_s10 = inlined_call_operand.hbm [shape: bf16[128,384], index: 10, kind: output, shape index: {1}]   ;;  %s3970_s11 = inlined_call_operand.hbm [shape: f32[384,128], index: 11, kind: output, shape index: {2}]  }
   0x1   :  { %3981 = sst [smem:[#allocation21_spill]] %s3968_s9 }
   0x2   :  { %3982 = sst [smem:[#allocation22_spill]] %s3969_s10 }
   0x3   :  { %3983 = sst [smem:[#allocation23_spill]] %s3970_s11 }
   0x4   :  { %17 = vsyncpa [#allocation3], 0 }
   0x5   :  { %19 = vsyncpa [#allocation3 + $0x1], 0 }
   0x6   :  { %20 = vsyncpa [#allocation6], 0 }
   0x7   :  { %21 = vsyncpa [#allocation9], 0 }
   0x8   :  { %22 = vsyncpa [#allocation4], 0 }
   0x9   :  { %24 = vsyncpa [#allocation4 + $0x1], 0 }
   0xa   :  { %25 = vsyncpa [#allocation12], 0 }
   0xb   :  { %27 = vsyncpa [#allocation12 + $0x1], 0  ;;  %s3035_s17 = smov 0   ;;  %s3037_s18 = smov 0  }
   0xc   :  { %s3039_s19 = smov 0   ;;  %s3041_s20 = smov 0  }
   0xd LB: > { %3984 = sst [smem:[#allocation19_spill]] %s2947_s17  ;;  %s3056_s21 = sadd.s32 4294967295, %s2959_s20   ;;  %s2959_s20 = sphi %s3041_s20, %s4011_s20   ;;  %s2955_s19 = sphi %s3039_s19, %s4010_s19   ;;  %s2951_s18 = sphi %s3037_s18, %s4009_s18   ;;  %s2947_s17 = sphi %s3035_s17, %s4008_s17  }
   0xe   : > { %s3971_s22 = sadd.s32 4294967294, %s2959_s20   ;;  %p53_p0 = scmp.ne.s32.totalorder %s2951_s18, %s2947_s17 }
   0xf   : > { %p3973_p1 = scmp.eq.s32.totalorder %s3056_s21, 0  ;;  %p251_p3 = scmp.eq.s32.totalorder %s3971_s22, 2 }
  0x10   : > { %p2041_p5 = scmp.ge.s32.totalorder %s2959_s20, 1  ;;  %p310_p7 = scmp.lt.s32.totalorder %s2959_s20, 4 }
  0x11   : > { %p3067_p4 = por %p3973_p1, %p53_p0  ;;  %p3072_p6 = por %p251_p3, %p53_p0 }
  0x12   : > { %p3077_p8 = pnand %p2041_p5, %p310_p7  ;;  %s2961_s26 = smov [#allocation5]  }
  0x13   : > { %s3985_s23 = scalar_select %p3067_p4, 1, 0 }
  0x14   : > { %s3986_s24 = scalar_select %p3072_p6, 1, 0 }
  0x15   : > { %s3988_s25 = scalar_select %p3077_p8, 1, 0 }
  0x16   : > { %3987 = sst [smem:[#allocation20_spill]] %s3986_s24  ;;  %s322_s27 = sshll.u32 %s2961_s26, 4  ;;  %s3081_s27 = int_to_ptr.vmem [resolvable:$true] %s322_s27 }
  0x17   : > { %p2445_p9 = pneg %p3077_p8  ;;  %s2962_s29 = smov [#allocation7]  }
  0x18   : > { %s344_s30 = sshll.u32 %s2962_s29, 4  ;;  %s2963_s12 = smov [#allocation8]   ;;  %s3091_s30 = int_to_ptr.vmem [resolvable:$true] %s344_s30 }
  0x19   : > { %p3087_p10 = pnand %p2445_p9, %p3973_p1  ;;  %s3093_s13 = sshll.u32 %s2963_s12, 4  ;;  %s361_s13 = int_to_ptr.vmem [resolvable:$true] %s3093_s13 }
  0x1a   : > { %s2711_s16 = scalar_lea.hbm %s3960_s1, 1024 }
  0x1b   : > { %p2712_p11 = scmp.ne.s32.totalorder %s3960_s1, %s2711_s16  ;;  %p3103_p12 = pneg %p3087_p10 }
  0x1c   : > { %p2718_p3 = scmp.lt.u32.totalorder %s2711_s16, %s3960_s1 }
  0x1d   : > { %p2714_p13 = pnand %p3103_p12, %p2712_p11 }
  0x1f   : > { %p2715_p0 = pneg %p2714_p13 }
  0x21   : > { %p2720_p5 = pnand %p2718_p3, %p2715_p0 }
  0x23   : > { %2723 = shalt.err (!%p2720_p5)
}
  0x24   : > { %s2724_s22 = scalar_lea.vmem %s3081_s27, 1024  ;;  %p2732_p2 = scmp.lt.s32.totalorder %s3081_s27, %s3081_s27 }
  0x25   : > { %p2725_p7 = scmp.ne.s32.totalorder %s3081_s27, %s2724_s22  ;;  %p2733_p6 = scmp.lt.s32.totalorder %s2724_s22, %s2724_s22 }
  0x27   : > { %p2727_p9 = pnand %p2725_p7, %p3103_p12  ;;  %p2734_p11 = por %p2733_p6, %p2732_p2 }
  0x29   : > { %p2728_p1 = pneg %p2727_p9 }
  0x2b   : > { %p2735_p13 = pnand %p2734_p11, %p2728_p1 }
  0x2d   : > { %2738 = shalt.err (!%p2735_p13)
}
  0x2e   : > { %s2964_s14 = smov 64   ;;  %s2965_s15 = smov 4  }
  0x2f   : > { %2448 = dma.hbm_to_vmem [thread:$0]  (!%p3087_p10), %s3960_s1, 1024, %s3081_s27, [#allocation6], %s2964_s14, %s2964_s14, %s2965_s15  }
  0x30   : > { %s2739_s22 = scalar_lea.hbm %s3964_s5, 1024 }
  0x31   : > { %p2740_p1 = scmp.ne.s32.totalorder %s3964_s5, %s2739_s22  ;;  %p2746_p0 = scmp.lt.u32.totalorder %s2739_s22, %s3964_s5 }
  0x33   : > { %p2742_p2 = pnand %p2740_p1, %p3103_p12 }
  0x35   : > { %p2743_p6 = pneg %p2742_p2 }
  0x37   : > { %p2748_p3 = pnand %p2746_p0, %p2743_p6 }
  0x39   : > { %2751 = shalt.err (!%p2748_p3)
}
  0x3a   : > { %s2752_s27 = scalar_lea.vmem %s3091_s30, 1024  ;;  %p2760_p11 = scmp.lt.s32.totalorder %s3091_s30, %s3091_s30 }
  0x3b   : > { %p2753_p5 = scmp.ne.s32.totalorder %s3091_s30, %s2752_s27  ;;  %p2761_p13 = scmp.lt.s32.totalorder %s2752_s27, %s2752_s27 }
  0x3d   : > { %p2755_p7 = pnand %p2753_p5, %p3103_p12  ;;  %p2762_p1 = por %p2761_p13, %p2760_p11 }
  0x3f   : > { %p2756_p9 = pneg %p2755_p7 }
  0x41   : > { %p2763_p2 = pnand %p2762_p1, %p2756_p9 }
  0x43   : > { %2766 = shalt.err (!%p2763_p2)
}
  0x44   : > { %2451 = dma.hbm_to_vmem [thread:$0]  (!%p3087_p10), %s3964_s5, 1024, %s3091_s30, [#allocation6], %s2964_s14, %s2964_s14, %s2965_s15  }
  0x45   : > { %s2767_s16 = scalar_lea.hbm %s3966_s7, 1024 }
  0x46   : > { %p2768_p6 = scmp.ne.s32.totalorder %s3966_s7, %s2767_s16  ;;  %p2774_p5 = scmp.lt.u32.totalorder %s2767_s16, %s3966_s7 }
  0x48   : > { %p2770_p0 = pnand %p2768_p6, %p3103_p12 }
  0x4a   : > { %p2771_p3 = pneg %p2770_p0 }
  0x4c   : > { %p2776_p7 = pnand %p2774_p5, %p2771_p3 }
  0x4e   : > { %2779 = shalt.err (!%p2776_p7)
}
  0x4f   : > { %s2780_s27 = scalar_lea.vmem %s361_s13, 1024  ;;  %p2788_p1 = scmp.lt.s32.totalorder %s361_s13, %s361_s13 }
  0x50   : > { %p2781_p9 = scmp.ne.s32.totalorder %s361_s13, %s2780_s27  ;;  %p2789_p2 = scmp.lt.s32.totalorder %s2780_s27, %s2780_s27 }
  0x52   : > { %p2783_p11 = pnand %p2781_p9, %p3103_p12  ;;  %p2790_p4 = por %p2789_p2, %p2788_p1 }
  0x54   : > { %p2784_p13 = pneg %p2783_p11 }
  0x56   : > { %p2791_p8 = pnand %p2790_p4, %p2784_p13 }
  0x58   : > { %2794 = shalt.err (!%p2791_p8)
}
  0x59   : > { %2454 = dma.hbm_to_vmem [thread:$0]  (!%p3087_p10), %s3966_s7, 1024, %s361_s13, [#allocation9], %s2964_s14, %s2964_s14, %s2965_s15  }
  0x5a   : > { %s3176_s24 = sadd.s32 1, %s2959_s20   ;;  %s40_s10 = sadd.s32 1, %s2955_s19 }
  0x5b   : > { %s37_s28 = ssub.s32 %s2959_s20, %s3176_s24  ;;  %p47_p8 = scmp.ne.s32.totalorder %s2955_s19, %s2951_s18 }
  0x5c   : > { %p38_p4 = scmp.eq.s32.totalorder %s37_s28, 0  ;;  %p48_p12 = scmp.eq.s32.totalorder %s2959_s20, 0 }
  0x5d   : > { %p2472_p6 = scmp.lt.s32.totalorder %s2959_s20, 3  ;;  %p3991_p3 = scmp.eq.s32.totalorder %s3056_s21, 2 }
  0x5e   : > { %s3186_s11 = scalar_select %p38_p4, %s2955_s19, %s40_s10  }
  0x5f   : > { %p49_p0 = por %p48_p12, %p47_p8  ;;  %p3190_p5 = por %p3991_p3, %p47_p8 }
  0x60   : > { %s377_s16 = sand.u32 1, %s2955_s19   ;;  %s2136_s26 = sshll.u32 %s2959_s20, 10 }
  0x61   : > { %s2046_s13 = sshll.u32 %s377_s16, 6  ;;  %s3199_s22 = scalar_lea.hbm %s3959_s0, %s2136_s26 }
  0x62   : > { %s381_s27 = scalar_lea.vmem [#allocation2], %s2046_s13  ;;  %p3201_p10 = pnand %p2472_p6, %p49_p0 }
  0x63   : > { %s388_s30 = sshll.u32 %s381_s27, 4  ;;  %s3207_s28 = scalar_lea.sflag [#allocation3], %s377_s16  ;;  %s3205_s30 = int_to_ptr.vmem [resolvable:$true] %s388_s30 }
  0x64   : > { %s2795_s10 = scalar_lea.hbm %s3199_s22, 1024  ;;  %p2797_p9 = pneg %p3201_p10 }
  0x65   : > { %p2796_p7 = scmp.ne.s32.totalorder %s3199_s22, %s2795_s10  ;;  %s2800_s29 = scalar_lea.hbm %s3959_s0, 3072 }
  0x66   : > { %p2801_p1 = scmp.lt.u32.totalorder %s3199_s22, %s3959_s0  ;;  %p2802_p2 = scmp.lt.u32.totalorder %s2800_s29, %s2795_s10 }
  0x67   : > { %p2798_p11 = pnand %p2797_p9, %p2796_p7  ;;  %p2804_p8 = scmp.lt.u32.totalorder %s2795_s10, %s3199_s22 }
  0x68   : > { %p2803_p4 = por %p2802_p2, %p2801_p1 }
  0x69   : > { %p2799_p13 = pneg %p2798_p11 }
  0x6a   : > { %p2805_p12 = por %p2804_p8, %p2803_p4 }
  0x6c   : > { %p2806_p6 = pnand %p2805_p12, %p2799_p13 }
  0x6e   : > { %2809 = shalt.err (!%p2806_p6)
}
  0x6f   : > { %s2810_s16 = scalar_lea.vmem %s3205_s30, 1024  ;;  %s2966_s26 = smov [#allocation2]  }
  0x70   : > { %p2811_p0 = scmp.ne.s32.totalorder %s3205_s30, %s2810_s16  ;;  %s2815_s13 = sshll.u32 %s2966_s26, 4  ;;  %s2816_s13 = int_to_ptr.vmem [resolvable:$false] %s2815_s13 }
  0x71   : > { %s2817_s12 = scalar_lea.vmem %s2816_s13, 2048  ;;  %p2818_p11 = scmp.lt.s32.totalorder %s3205_s30, %s2816_s13 }
  0x72   : > { %p2813_p3 = pnand %p2811_p0, %p2797_p9  ;;  %p2819_p1 = scmp.lt.s32.totalorder %s2817_s12, %s2810_s16 }
  0x74   : > { %p2814_p7 = pneg %p2813_p3  ;;  %p2820_p2 = por %p2819_p1, %p2818_p11 }
  0x76   : > { %p2821_p4 = pnand %p2820_p2, %p2814_p7 }
  0x78   : > { %2824 = shalt.err (!%p2821_p4)
}
  0x79   : > { %2458 = dma.hbm_to_vmem [thread:$0]  (!%p3201_p10), %s3199_s22, 1024, %s3205_s30, %s3207_s28, %s2964_s14, %s2964_s14, %s2965_s15  }
  0x7a   : > { %p3994_p9 = scmp.ne.s32.totalorder %s3988_s25, 0 }
  0x7b   : > { %s3241_s10 = sand.u32 (!%p3994_p9), 1, %s2951_s18   ;;  %p3995_p13 = scmp.ne.s32.totalorder (!%p3994_p9), %s3985_s23, 0 }
  0x7c   : > { %400 = sbr.rel (%p3994_p9) target bundleno = 1558 (0x616), region = 56  ;;  %s3244_s29 = sshll.u32 (!%p3994_p9), %s3241_s10, 6 }
  0x7d   : > { %s403_s9 = scalar_lea.sflag (!%p3994_p9), [#allocation3], %s3241_s10  ;;  %s3248_s27 = scalar_lea.vmem (!%p3994_p9), [#allocation2], %s3244_s29 }
  0x83   : > { %2926 = dma.done.wait (%p3995_p13), %s403_s9, 1024  }
  0x84   : > { %2928 = vsyncadd (%p3995_p13), %s403_s9, 4294966272  ;;  %p3996_p10 = scmp.eq.s32.totalorder %s3056_s21, 0 }
  0x86   : > { %2930 = dma.done.wait (%p3996_p10), [#allocation6], 2048   ;;  %p3997_p8 = pmov %p3996_p10 }
  0x88   : > { %2932 = vsyncadd (%p3997_p8), [#allocation6], 4294965248  ;;  %p3998_p12 = pmov %p3997_p8 }
  0x89   : > { %p3999_p6 = pmov %p3997_p8 }
  0x8a   : > { %2934 = dma.done.wait (%p3998_p12), [#allocation9], 1024  }
  0x8b   : > { %2936 = vsyncadd (%p3999_p6), [#allocation9], 4294966272  ;;  %v2519_v0 = vld [vmem:[#allocation5] sm:$0xff]   ;;  %v2520_v1 = vld [vmem:[#allocation5 + $0x8] sm:$0xff]   ;;  %s3611_s26 = scalar_lea.vmem [#allocation10], %s3244_s29  ;;  %s4000_s14 = sld [smem:[#allocation21_spill]] }
  0x8c   : > { %2313 = vmatprep.subr.bf16.mxu0 %v2519_v0  ;;  %v2521_v2 = vld [vmem:[#allocation5 + $0x10] sm:$0xff]   ;;  %v2522_v3 = vld [vmem:[#allocation5 + $0x18] sm:$0xff]   ;;  %v2527_v4 = vld [vmem:[%s3248_s27] sm:$0xff]   ;;  %s1846_s9 = sshll.u32 %s3611_s26, 4  ;;  %s1823_s22 = scalar_lea.sflag [#allocation4], %s3241_s10  ;;  %s3793_s9 = int_to_ptr.vmem [resolvable:$true] %s1846_s9 }
  0x8d   : > { %2314 = vmatpush3.bf16.msra.mxu0 %v2519_v0  ;;  %2329 = vmatprep.mubr.bf16.mxu0 %v2527_v4  ;;  %v2523_v5 = vld [vmem:[#allocation5 + $0x20] sm:$0xff]   ;;  %v2524_v6 = vld [vmem:[#allocation5 + $0x28] sm:$0xff]   ;;  %v2525_v7 = vld [vmem:[#allocation5 + $0x30] sm:$0xff]   ;;  %s2825_s30 = scalar_lea.vmem %s3793_s9, 1024  ;;  %s2967_s28 = smov [#allocation10]  }
  0x8e   : > { %2315 = vmatprep.subr.bf16.mxu0 %v2520_v1  ;;  %v2526_v8 = vld [vmem:[#allocation5 + $0x38] sm:$0xff]   ;;  %v2528_v9 = vld [vmem:[%s3248_s27 + $0x8] sm:$0xff]   ;;  %v2529_v10 = vld [vmem:[%s3248_s27 + $0x10] sm:$0xff]   ;;  %p2826_p0 = scmp.ne.s32.totalorder %s3793_s9, %s2825_s30  ;;  %s2829_s16 = sshll.u32 %s2967_s28, 4  ;;  %s2830_s16 = int_to_ptr.vmem [resolvable:$false] %s2829_s16 }
  0x8f   : > { %v2530_v11 = vld [vmem:[%s3248_s27 + $0x18] sm:$0xff]   ;;  %v2531_v12 = vld [vmem:[%s3248_s27 + $0x20] sm:$0xff]   ;;  %v2532_v13 = vld [vmem:[%s3248_s27 + $0x28] sm:$0xff]   ;;  %p2832_p11 = scmp.lt.s32.totalorder %s3793_s9, %s2830_s16 }
  0x90   : > { %v2533_v14 = vld [vmem:[%s3248_s27 + $0x30] sm:$0xff]   ;;  %v2534_v15 = vld [vmem:[%s3248_s27 + $0x38] sm:$0xff]   ;;  %v3273_v16 = vld [vmem:[%s3961_s2] ss:$0 sm:$0xff]  ;;  %s2169_s27 = sshll.u32 %s3056_s21, 10  ;;  %p2827_p3 = pnand %p2826_p0, %p3190_p5 }
  0x91   : > { %2316 = vmatpush3.bf16.msra.mxu0 %v2520_v1  ;;  %s3798_s15 = scalar_lea.hbm %s4000_s14, %s2169_s27 }
  0x92   : > { %2317 = vmatprep.subr.bf16.mxu0 %v2521_v2  ;;  %p2828_p7 = pneg %p2827_p3 }
  0x95   : > { %2318 = vmatpush3.bf16.msra.mxu0 %v2521_v2 }
  0x96   : > { %2319 = vmatprep.subr.bf16.mxu0 %v2522_v3 }
  0x99   : > { %2320 = vmatpush3.bf16.msra.mxu0 %v2522_v3 }
  0x9a   : > { %2321 = vmatprep.subr.bf16.mxu0 %v2523_v5 }
  0x9d   : > { %2322 = vmatpush3.bf16.msra.mxu0 %v2523_v5 }
  0x9e   : > { %2323 = vmatprep.subr.bf16.mxu0 %v2524_v6 }
  0xa1   : > { %2324 = vmatpush3.bf16.msra.mxu0 %v2524_v6 }
  0xa2   : > { %2325 = vmatprep.subr.bf16.mxu0 %v2525_v7 }
  0xa5   : > { %2326 = vmatpush3.bf16.msra.mxu0 %v2525_v7 }
  0xa6   : > { %2327 = vmatprep.subr.bf16.mxu0 %v2526_v8 }
  0xa9   : > { %2328 = vmatpush3.bf16.msra.mxu0 %v2526_v8 }
  0xac   : > { %2330 = vmatmul.mubr.bf16.vlgmr.msra.gmra.mrb[0].mxu0 %v2528_v9 }
  0xad   : > { %2333 = vmatprep.mubr.bf16.mxu0 %v2529_v10 }
  0xb4   : > { %2334 = vmatmul.mubr.bf16.gmra.mrb[4].mxu0 %v2530_v11 }
  0xb5   : > { %2337 = vmatprep.mubr.bf16.mxu0 %v2531_v12 }
  0xbc   : > { %2338 = vmatmul.mubr.bf16.gmra.mrb[8].mxu0 %v2532_v13 }
  0xbd   : > { %2341 = vmatprep.mubr.bf16.mxu0 %v2533_v14 }
  0xc4   : > { %2342 = vmatmul.mubr.bf16.gmra.mrb[12].mxu0 %v2534_v15 }
 0x17f   : > { %v2331_v17 = vpop.f32.mrb[0].mxu0 }
 0x180   : > { %v649_v18 = vadd.f32 %v2331_v17, %v3273_v16  ;;  %v640_v19 = vpop.f32.mrb[1].mxu0 }
 0x181   : > { %v641_v20 = vadd.f32 %v3273_v16, %v640_v19  ;;  %v2332_v21 = vpop.f32.mrb[2].mxu0 }
 0x182   : > { %v721_v22 = vmul.f32 0.70710677, %v649_v18  ;;  %v652_v23 = vadd.f32 %v2332_v21, %v3273_v16  ;;  %v643_v24 = vpop.f32.mrb[3].mxu0  ;;  %v705_v43 = vmul.f32 0.5, %v649_v18 }
 0x183   : > { %v719_v25 = vmul.f32 0.70710677, %v641_v20  ;;  %v644_v26 = vadd.f32 %v3273_v16, %v643_v24  ;;  %v703_v47 = vmul.f32 0.5, %v641_v20 }
 0x184   : > { %2551 = verf.f32 %v721_v22  ;;  %v722_v27 = vmul.f32 0.70710677, %v652_v23  ;;  %v706_v60 = vmul.f32 0.5, %v652_v23 }
 0x185   : > { %2553 = verf.f32 %v719_v25  ;;  %v720_v28 = vmul.f32 0.70710677, %v644_v26  ;;  %v704_v63 = vmul.f32 0.5, %v644_v26 }
 0x186   : > { %2555 = verf.f32 %v722_v27 }
 0x187   : > { %2557 = verf.f32 %v720_v28  ;;  %v2335_v29 = vpop.f32.mrb[4].mxu0 }
 0x188   : > { %v3280_v30 = vadd.f32 %v2335_v29, %v3273_v16  ;;  %v656_v31 = vpop.f32.mrb[5].mxu0 }
 0x189   : > { %v657_v32 = vadd.f32 %v3273_v16, %v656_v31  ;;  %v2336_v33 = vpop.f32.mrb[6].mxu0 }
 0x18a   : > { %v725_v34 = vmul.f32 0.70710677, %v3280_v30  ;;  %v3285_v35 = vadd.f32 %v2336_v33, %v3273_v16  ;;  %v659_v36 = vpop.f32.mrb[7].mxu0  ;;  %v709_v26 = vmul.f32 0.5, %v3280_v30 }
 0x18b   : > { %v723_v37 = vmul.f32 0.70710677, %v657_v32  ;;  %v660_v38 = vadd.f32 %v3273_v16, %v659_v36  ;;  %v707_v8 = vmul.f32 0.5, %v657_v32 }
 0x18c   : > { %2559 = verf.f32 %v725_v34  ;;  %v726_v39 = vmul.f32 0.70710677, %v3285_v35 }
 0x18d   : > { %2561 = verf.f32 %v723_v37  ;;  %v724_v40 = vmul.f32 0.70710677, %v660_v38  ;;  %v708_v22 = vmul.f32 0.5, %v660_v38 }
 0x18e   : > { %v2552_v41 = vpop.eup %2551 }
 0x18f   : > { %v2554_v42 = vpop.eup %2553  ;;  %2563 = verf.f32 %v724_v40  ;;  %v2339_v44 = vpop.f32.mrb[8].mxu0  ;;  %v753_v45 = vadd.f32 1.0, %v2552_v41 }
 0x190   : > { %v2556_v46 = vpop.eup %2555  ;;  %2565 = verf.f32 %v726_v39  ;;  %v3290_v48 = vadd.f32 %v2339_v44, %v3273_v16  ;;  %v672_v49 = vpop.f32.mrb[9].mxu0  ;;  %v751_v50 = vadd.f32 1.0, %v2554_v42 }
 0x191   : > { %v2558_v51 = vpop.eup %2557  ;;  %v673_v52 = vadd.f32 %v3273_v16, %v672_v49  ;;  %v2340_v53 = vpop.f32.mrb[10].mxu0  ;;  %v3293_v54 = vmul.f32 %v753_v45, %v705_v43  ;;  %v754_v55 = vadd.f32 1.0, %v2556_v46 }
 0x192   : > { %v729_v56 = vmul.f32 0.70710677, %v3290_v48  ;;  %v3297_v57 = vadd.f32 %v2340_v53, %v3273_v16  ;;  %v675_v58 = vpop.f32.mrb[11].mxu0  ;;  %v3299_v59 = vmul.f32 %v751_v50, %v703_v47  ;;  %v752_v1 = vadd.f32 1.0, %v2558_v51 }
 0x193   : > { %v727_v61 = vmul.f32 0.70710677, %v673_v52  ;;  %v676_v62 = vadd.f32 %v3273_v16, %v675_v58  ;;  %787 = vadd.xlane.f32.xlu1 %v3293_v54  ;;  %v3305_v3 = vmul.f32 %v754_v55, %v706_v60  ;;  %v711_v33 = vmul.f32 0.5, %v673_v52 }
 0x194   : > { %2567 = verf.f32 %v729_v56  ;;  %v730_v0 = vmul.f32 0.70710677, %v3297_v57  ;;  %783 = vadd.xlane.f32.xlu0 %v3299_v59  ;;  %v3307_v5 = vmul.f32 %v752_v1, %v704_v63  ;;  %v713_v30 = vmul.f32 0.5, %v3290_v48 }
 0x195   : > { %2569 = verf.f32 %v727_v61  ;;  %v728_v2 = vmul.f32 0.70710677, %v676_v62  ;;  %v712_v37 = vmul.f32 0.5, %v676_v62  ;;  %v714_v46 = vmul.f32 0.5, %v3297_v57 }
 0x196   : > { %v2560_v4 = vpop.eup %2559 }
 0x197   : > { %v2562_v6 = vpop.eup %2561  ;;  %2571 = verf.f32 %v728_v2  ;;  %789 = vadd.xlane.f32.xlu1 %v3305_v3  ;;  %v2343_v7 = vpop.f32.mrb[12].mxu0  ;;  %v757_v21 = vadd.f32 1.0, %v2560_v4  ;;  %v2535_v4 = vld [vmem:[#allocation7] sm:$0xff]  }
 0x198   : > { %2573 = verf.f32 %v730_v0  ;;  %v697_v9 = vadd.f32 %v2343_v7, %v3273_v16  ;;  %v688_v10 = vpop.f32.mrb[13].mxu0  ;;  %785 = vadd.xlane.f32.xlu0 %v3307_v5  ;;  %v755_v11 = vadd.f32 1.0, %v2562_v6  ;;  %2345 = vmatprep.subr.bf16.mxu1 %v2535_v4 }
 0x199   : > { %v2564_v12 = vpop.eup %2563  ;;  %v689_v13 = vadd.f32 %v3273_v16, %v688_v10  ;;  %v2344_v14 = vpop.f32.mrb[14].mxu0  ;;  %v3321_v34 = vmul.f32 %v757_v21, %v709_v26  ;;  %2346 = vmatpush3.bf16.msra.mxu1 %v2535_v4 }
 0x19a   : > { %v2566_v15 = vpop.eup %2565  ;;  %v733_v17 = vmul.f32 0.70710677, %v697_v9  ;;  %v700_v18 = vadd.f32 %v2344_v14, %v3273_v16  ;;  %v691_v19 = vpop.f32.mrb[15].mxu0  ;;  %v3314_v20 = vmul.f32 %v755_v11, %v707_v8  ;;  %v756_v25 = vadd.f32 1.0, %v2564_v12 }
 0x19b   : > { %v731_v23 = vmul.f32 0.70710677, %v689_v13  ;;  %v692_v24 = vadd.f32 %v3273_v16, %v691_v19  ;;  %v758_v31 = vadd.f32 1.0, %v2566_v15  ;;  %v710_v16 = vmul.f32 0.5, %v3285_v35 }
 0x19c   : > { %2575 = verf.f32 %v733_v17  ;;  %v734_v27 = vmul.f32 0.70710677, %v700_v18  ;;  %791 = vadd.xlane.f32.xlu0 %v3314_v20  ;;  %v3319_v29 = vmul.f32 %v756_v25, %v708_v22  ;;  %v715_v49 = vmul.f32 0.5, %v689_v13 }
 0x19d   : > { %2577 = verf.f32 %v731_v23  ;;  %v732_v28 = vmul.f32 0.70710677, %v692_v24  ;;  %v3327_v41 = vmul.f32 %v758_v31, %v710_v16  ;;  %v717_v52 = vmul.f32 0.5, %v697_v9 }
 0x19e   : > { %v2568_v32 = vpop.eup %2567  ;;  %2579 = verf.f32 %v734_v27  ;;  %793 = vadd.xlane.f32.xlu1 %v3319_v29  ;;  %v716_v53 = vmul.f32 0.5, %v692_v24  ;;  %v718_v57 = vmul.f32 0.5, %v700_v18 }
 0x19f   : > { %v2570_v36 = vpop.eup %2569  ;;  %2581 = verf.f32 %v732_v28  ;;  %v761_v39 = vadd.f32 1.0, %v2568_v32 }
 0x1a0   : > { %795 = vadd.xlane.f32.xlu0 %v3321_v34  ;;  %v759_v38 = vadd.f32 1.0, %v2570_v36 }
 0x1a1   : > { %v2572_v40 = vpop.eup %2571  ;;  %v3335_v45 = vmul.f32 %v761_v39, %v713_v30 }
 0x1a2   : > { %v2574_v42 = vpop.eup %2573  ;;  %v3329_v43 = vmul.f32 %v759_v38, %v711_v33  ;;  %v760_v44 = vadd.f32 1.0, %v2572_v40  ;;  %797 = vadd.xlane.f32.xlu1 %v3327_v41 }
 0x1a3   : > { %v762_v47 = vadd.f32 1.0, %v2574_v42 }
 0x1a4   : > { %799 = vadd.xlane.f32.xlu0 %v3329_v43  ;;  %v3333_v35 = vmul.f32 %v760_v44, %v712_v37 }
 0x1a5   : > { %v3340_v60 = vmul.f32 %v762_v47, %v714_v46 }
 0x1a6   : > { %v2576_v48 = vpop.eup %2575  ;;  %801 = vadd.xlane.f32.xlu1 %v3333_v35 }
 0x1a7   : > { %v2578_v50 = vpop.eup %2577  ;;  %v765_v56 = vadd.f32 1.0, %v2576_v48 }
 0x1a8   : > { %v2580_v51 = vpop.eup %2579  ;;  %803 = vadd.xlane.f32.xlu0 %v3335_v45  ;;  %v763_v55 = vadd.f32 1.0, %v2578_v50 }
 0x1a9   : > { %v2582_v58 = vpop.eup %2581  ;;  %v766_v63 = vadd.f32 1.0, %v2580_v51  ;;  %v3348_v1 = vmul.f32 %v765_v56, %v717_v52 }
 0x1aa   : > { %v3342_v61 = vmul.f32 %v763_v55, %v715_v49  ;;  %v764_v62 = vadd.f32 1.0, %v2582_v58  ;;  %805 = vadd.xlane.f32.xlu1 %v3340_v60  ;;  %v2536_v49 = vld [vmem:[#allocation7 + $0x8] sm:$0xff]   ;;  %v2537_v58 = vld [vmem:[#allocation7 + $0x10] sm:$0xff]  }
 0x1ab   : > { %v3351_v2 = vmul.f32 %v766_v63, %v718_v57  ;;  %2347 = vmatprep.subr.bf16.mxu1 %v2536_v49 }
 0x1ac   : > { %807 = vadd.xlane.f32.xlu0 %v3342_v61  ;;  %v3346_v0 = vmul.f32 %v764_v62, %v716_v53  ;;  %2348 = vmatpush3.bf16.msra.mxu1 %v2536_v49 }
 0x1ad   : > { %2349 = vmatprep.subr.bf16.mxu1 %v2537_v58 }
 0x1ae   : > { %809 = vadd.xlane.f32.xlu1 %v3346_v0 }
 0x1b0   : > { %811 = vadd.xlane.f32.xlu0 %v3348_v1  ;;  %2350 = vmatpush3.bf16.msra.mxu1 %v2537_v58 }
 0x1b2   : > { %813 = vadd.xlane.f32.xlu1 %v3351_v2 }
 0x220   : > { %v788_v6 = vpop.xlane.xlu1 %787 }
 0x221   : > { %v784_v7 = vpop.xlane.xlu0 %783  ;;  %v818_v8 = vmul.f32 0.0078125, %v788_v6 }
 0x222   : > { %v816_v9 = vmul.f32 0.0078125, %v784_v7  ;;  %v2538_v7 = vld [vmem:[#allocation7 + $0x18] sm:$0xff]  }
 0x223   : > { %v3359_v13 = vsub.f32 %v3293_v54, %v818_v8  ;;  %2351 = vmatprep.subr.bf16.mxu1 %v2538_v7 }
 0x224   : > { %v3356_v10 = vsub.f32 %v3299_v59, %v816_v9  ;;  %v790_v11 = vpop.xlane.xlu1 %789  ;;  %2352 = vmatpush3.bf16.msra.mxu1 %v2538_v7 }
 0x225   : > { %v786_v12 = vpop.xlane.xlu0 %785  ;;  %v819_v14 = vmul.f32 0.0078125, %v790_v11  ;;  %v850_v22 = vmul.f32 %v3359_v13, %v3359_v13 }
 0x226   : > { %v817_v15 = vmul.f32 0.0078125, %v786_v12  ;;  %v848_v17 = vmul.f32 %v3356_v10, %v3356_v10  ;;  %v2540_v12 = vld [vmem:[#allocation7 + $0x28] sm:$0xff]  }
 0x227   : > { %v3367_v21 = vsub.f32 %v3305_v3, %v819_v14  ;;  %v2541_v14 = vld [vmem:[#allocation7 + $0x30] sm:$0xff]  }
 0x228   : > { %v3364_v18 = vsub.f32 %v3307_v5, %v817_v15  ;;  %864 = vadd.xlane.f32.xlu0 %v848_v17  ;;  %v2542_v15 = vld [vmem:[#allocation7 + $0x38] sm:$0xff]   ;;  %v3437_v17 = vld [vmem:[#allocation8 + $0x8] sm:$0xff]  }
 0x229   : > { %v792_v19 = vpop.xlane.xlu0 %791  ;;  %v851_v3 = vmul.f32 %v3367_v21, %v3367_v21 }
 0x22a   : > { %v820_v59 = vmul.f32 0.0078125, %v792_v19  ;;  %v849_v54 = vmul.f32 %v3364_v18, %v3364_v18  ;;  %v3443_v19 = vld [vmem:[#allocation8 + $0x10] sm:$0xff]  }
 0x22b   : > { %v794_v24 = vpop.xlane.xlu1 %793 }
 0x22c   : > { %v3374_v23 = vsub.f32 %v3314_v20, %v820_v59  ;;  %868 = vadd.xlane.f32.xlu0 %v850_v22  ;;  %866 = vadd.xlane.f32.xlu1 %v849_v54  ;;  %v821_v5 = vmul.f32 0.0078125, %v794_v24  ;;  %v3447_v59 = vld [vmem:[#allocation8 + $0x18] sm:$0xff]   ;;  %v3451_v22 = vld [vmem:[#allocation8 + $0x20] sm:$0xff]   ;;  %v3455_v54 = vld [vmem:[#allocation8 + $0x28] sm:$0xff]  }
 0x22d   : > { %v796_v25 = vpop.xlane.xlu0 %795 }
 0x22e   : > { %v822_v26 = vmul.f32 0.0078125, %v796_v25  ;;  %v852_v27 = vmul.f32 %v3374_v23, %v3374_v23  ;;  %v3381_v28 = vsub.f32 %v3319_v29, %v821_v5 }
 0x22f   : > { %v798_v20 = vpop.xlane.xlu1 %797 }
 0x230   : > { %v3384_v31 = vsub.f32 %v3321_v34, %v822_v26  ;;  %870 = vadd.xlane.f32.xlu1 %v851_v3  ;;  %872 = vadd.xlane.f32.xlu0 %v852_v27  ;;  %v823_v32 = vmul.f32 0.0078125, %v798_v20  ;;  %v853_v16 = vmul.f32 %v3381_v28, %v3381_v28 }
 0x231   : > { %v800_v33 = vpop.xlane.xlu0 %799 }
 0x232   : > { %v824_v36 = vmul.f32 0.0078125, %v800_v33  ;;  %v854_v30 = vmul.f32 %v3384_v31, %v3384_v31  ;;  %v3391_v37 = vsub.f32 %v3327_v41, %v823_v32 }
 0x233   : > { %v802_v34 = vpop.xlane.xlu1 %801 }
 0x234   : > { %v3394_v29 = vsub.f32 %v3329_v43, %v824_v36  ;;  %874 = vadd.xlane.f32.xlu1 %v853_v16  ;;  %876 = vadd.xlane.f32.xlu0 %v854_v30  ;;  %v825_v38 = vmul.f32 0.0078125, %v802_v34  ;;  %v855_v42 = vmul.f32 %v3391_v37, %v3391_v37 }
 0x235   : > { %v804_v39 = vpop.xlane.xlu0 %803 }
 0x236   : > { %v826_v40 = vmul.f32 0.0078125, %v804_v39  ;;  %v856_v44 = vmul.f32 %v3394_v29, %v3394_v29  ;;  %v3401_v46 = vsub.f32 %v3333_v35, %v825_v38 }
 0x237   : > { %v806_v43 = vpop.xlane.xlu1 %805 }
 0x238   : > { %v3404_v41 = vsub.f32 %v3335_v45, %v826_v40  ;;  %878 = vadd.xlane.f32.xlu1 %v855_v42  ;;  %880 = vadd.xlane.f32.xlu0 %v856_v44  ;;  %v827_v47 = vmul.f32 0.0078125, %v806_v43  ;;  %v857_v51 = vmul.f32 %v3401_v46, %v3401_v46 }
 0x239   : > { %v808_v48 = vpop.xlane.xlu0 %807 }
 0x23a   : > { %v828_v50 = vmul.f32 0.0078125, %v808_v48  ;;  %v858_v52 = vmul.f32 %v3404_v41, %v3404_v41  ;;  %v3411_v53 = vsub.f32 %v3340_v60, %v827_v47 }
 0x23b   : > { %v810_v45 = vpop.xlane.xlu1 %809 }
 0x23c   : > { %v3414_v35 = vsub.f32 %v3342_v61, %v828_v50  ;;  %882 = vadd.xlane.f32.xlu1 %v857_v51  ;;  %884 = vadd.xlane.f32.xlu0 %v858_v52  ;;  %v829_v55 = vmul.f32 0.0078125, %v810_v45  ;;  %v859_v57 = vmul.f32 %v3411_v53, %v3411_v53 }
 0x23d   : > { %v812_v56 = vpop.xlane.xlu0 %811 }
 0x23e   : > { %v830_v62 = vmul.f32 0.0078125, %v812_v56  ;;  %v860_v63 = vmul.f32 %v3414_v35, %v3414_v35  ;;  %v3421_v60 = vsub.f32 %v3346_v0, %v829_v55  ;;  %v2539_v0 = vld [vmem:[#allocation7 + $0x20] sm:$0xff]  }
 0x23f   : > { %v814_v4 = vpop.xlane.xlu1 %813  ;;  %2353 = vmatprep.subr.bf16.mxu1 %v2539_v0  ;;  %v3464_v56 = vld [vmem:[%s3962_s3] ss:$0 sm:$0xff] }
 0x240   : > { %v3424_v61 = vsub.f32 %v3348_v1, %v830_v62  ;;  %886 = vadd.xlane.f32.xlu1 %v859_v57  ;;  %888 = vadd.xlane.f32.xlu0 %v860_v63  ;;  %v831_v6 = vmul.f32 0.0078125, %v814_v4  ;;  %v861_v8 = vmul.f32 %v3421_v60, %v3421_v60 }
 0x241   : > { %2354 = vmatpush3.bf16.msra.mxu1 %v2539_v0  ;;  %v3471_v0 = vld [vmem:[%s3963_s4] ss:$0 sm:$0xff] }
 0x242   : > { %v862_v9 = vmul.f32 %v3424_v61, %v3424_v61  ;;  %v3431_v11 = vsub.f32 %v3351_v2, %v831_v6  ;;  %2355 = vmatprep.subr.bf16.mxu1 %v2540_v12  ;;  %v3435_v2 = vld [vmem:[#allocation8] sm:$0xff]  }
 0x243   : > { %2377 = vmatprep.subr.bf16.mxu0 %v3435_v2 }
 0x244   : > { %890 = vadd.xlane.f32.xlu1 %v861_v8  ;;  %892 = vadd.xlane.f32.xlu0 %v862_v9  ;;  %v863_v1 = vmul.f32 %v3431_v11, %v3431_v11 }
 0x245   : > { %2356 = vmatpush3.bf16.msra.mxu1 %v2540_v12  ;;  %2378 = vmatpush3.bf16.msra.mxu0 %v3435_v2 }
 0x246   : > { %2357 = vmatprep.subr.bf16.mxu1 %v2541_v14  ;;  %2379 = vmatprep.subr.bf16.mxu0 %v3437_v17 }
 0x248   : > { %894 = vadd.xlane.f32.xlu1 %v863_v1 }
 0x249   : > { %2358 = vmatpush3.bf16.msra.mxu1 %v2541_v14  ;;  %2380 = vmatpush3.bf16.msra.mxu0 %v3437_v17 }
 0x24a   : > { %2359 = vmatprep.subr.bf16.mxu1 %v2542_v15  ;;  %2381 = vmatprep.subr.bf16.mxu0 %v3443_v19 }
 0x24d   : > { %2360 = vmatpush3.bf16.msra.mxu1 %v2542_v15  ;;  %2382 = vmatpush3.bf16.msra.mxu0 %v3443_v19 }
 0x24e   : > { %2409 = vmatprep.subr.bf16.mxu1 %v3435_v2  ;;  %2383 = vmatprep.subr.bf16.mxu0 %v3447_v59 }
 0x251   : > { %2384 = vmatpush3.bf16.msra.mxu0 %v3447_v59 }
 0x252   : > { %2385 = vmatprep.subr.bf16.mxu0 %v3451_v22 }
 0x255   : > { %2386 = vmatpush3.bf16.msra.mxu0 %v3451_v22 }
 0x256   : > { %2387 = vmatprep.subr.bf16.mxu0 %v3455_v54 }
 0x259   : > { %2388 = vmatpush3.bf16.msra.mxu0 %v3455_v54 }
 0x2b5   : > { %v865_v24 = vpop.xlane.xlu0 %864 }
 0x2b6   : > { %v896_v5 = vmul.f32 0.0078125, %v865_v24 }
 0x2b8   : > { %v912_v25 = vadd.f32 1e-06, %v896_v5 }
 0x2b9   : > { %v867_v26 = vpop.xlane.xlu1 %866  ;;  %v869_v3 = vpop.xlane.xlu0 %868 }
 0x2ba   : > { %2583 = vrsqrt.f32 %v912_v25  ;;  %v897_v27 = vmul.f32 0.0078125, %v867_v26  ;;  %v898_v20 = vmul.f32 0.0078125, %v869_v3 }
 0x2bc   : > { %v913_v32 = vadd.f32 1e-06, %v897_v27  ;;  %v914_v33 = vadd.f32 1e-06, %v898_v20 }
 0x2bd   : > { %v871_v36 = vpop.xlane.xlu1 %870  ;;  %v873_v16 = vpop.xlane.xlu0 %872 }
 0x2be   : > { %2585 = vrsqrt.f32 %v913_v32  ;;  %v899_v30 = vmul.f32 0.0078125, %v871_v36  ;;  %v900_v34 = vmul.f32 0.0078125, %v873_v16 }
 0x2bf   : > { %2587 = vrsqrt.f32 %v914_v33 }
 0x2c0   : > { %v915_v38 = vadd.f32 1e-06, %v899_v30  ;;  %v916_v39 = vadd.f32 1e-06, %v900_v34 }
 0x2c1   : > { %v875_v40 = vpop.xlane.xlu1 %874  ;;  %v877_v42 = vpop.xlane.xlu0 %876 }
 0x2c2   : > { %2589 = vrsqrt.f32 %v915_v38  ;;  %v901_v44 = vmul.f32 0.0078125, %v875_v40  ;;  %v902_v43 = vmul.f32 0.0078125, %v877_v42 }
 0x2c3   : > { %2591 = vrsqrt.f32 %v916_v39 }
 0x2c4   : > { %v2584_v47 = vpop.eup %2583  ;;  %v917_v48 = vadd.f32 1e-06, %v901_v44  ;;  %v918_v49 = vadd.f32 1e-06, %v902_v43 }
 0x2c5   : > { %v879_v50 = vpop.xlane.xlu1 %878  ;;  %v881_v51 = vpop.xlane.xlu0 %880  ;;  %v944_v52 = vmul.f32 %v2584_v47, %v3356_v10 }
 0x2c6   : > { %2593 = vrsqrt.f32 %v917_v48  ;;  %v903_v45 = vmul.f32 0.0078125, %v879_v50  ;;  %v904_v55 = vmul.f32 0.0078125, %v881_v51 }
 0x2c7   : > { %2595 = vrsqrt.f32 %v918_v49  ;;  %v967_v8 = vmul.f32 %v3464_v56, %v944_v52 }
 0x2c8   : > { %v2586_v58 = vpop.eup %2585  ;;  %v919_v62 = vadd.f32 1e-06, %v903_v45  ;;  %v920_v57 = vadd.f32 1e-06, %v904_v55 }
 0x2c9   : > { %v2588_v63 = vpop.eup %2587  ;;  %v883_v4 = vpop.xlane.xlu1 %882  ;;  %v945_v7 = vmul.f32 %v2586_v58, %v3364_v18  ;;  %v990_v26 = vadd.f32 %v3471_v0, %v967_v8 }
 0x2ca   : > { %v885_v6 = vpop.xlane.xlu0 %884  ;;  %2597 = vrsqrt.f32 %v919_v62  ;;  %v905_v10 = vmul.f32 0.0078125, %v883_v4  ;;  %v946_v1 = vmul.f32 %v2588_v63, %v3359_v13 }
 0x2cb   : > { %v906_v9 = vmul.f32 0.0078125, %v885_v6  ;;  %2599 = vrsqrt.f32 %v920_v57  ;;  %v968_v12 = vmul.f32 %v3464_v56, %v945_v7 }
 0x2cc   : > { %v2590_v14 = vpop.eup %2589  ;;  %v921_v15 = vadd.f32 1e-06, %v905_v10  ;;  %v969_v20 = vmul.f32 %v3464_v56, %v946_v1 }
 0x2cd   : > { %v922_v24 = vadd.f32 1e-06, %v906_v9  ;;  %v2592_v5 = vpop.eup %2591  ;;  %v887_v18 = vpop.xlane.xlu1 %886  ;;  %v991_v3 = vadd.f32 %v3471_v0, %v968_v12  ;;  %v947_v27 = vmul.f32 %v2590_v14, %v3367_v21 }
 0x2ce   : > { %v889_v25 = vpop.xlane.xlu0 %888  ;;  %2601 = vrsqrt.f32 %v921_v15  ;;  %v907_v32 = vmul.f32 0.0078125, %v887_v18  ;;  %v948_v16 = vmul.f32 %v2592_v5, %v3374_v23  ;;  %v992_v21 = vadd.f32 %v3471_v0, %v969_v20 }
 0x2cf   : > { %v908_v13 = vmul.f32 0.0078125, %v889_v25  ;;  %2603 = vrsqrt.f32 %v922_v24  ;;  %v1006_v33 = vpack.c.bf16 %v991_v3, %v990_v26  ;;  %v970_v36 = vmul.f32 %v3464_v56, %v947_v27 }
 0x2d0   : > { %v2594_v30 = vpop.eup %2593  ;;  %v923_v34 = vadd.f32 1e-06, %v907_v32  ;;  %v971_v47 = vmul.f32 %v3464_v56, %v948_v16 }
 0x2d1   : > { %v924_v38 = vadd.f32 1e-06, %v908_v13  ;;  %v2596_v39 = vpop.eup %2595  ;;  %v891_v40 = vpop.xlane.xlu1 %890  ;;  %2361 = vmatprep.mubr.bf16.mxu1 %v1006_v33  ;;  %v993_v44 = vadd.f32 %v3471_v0, %v970_v36  ;;  %v949_v43 = vmul.f32 %v2594_v30, %v3381_v28 }
 0x2d2   : > { %v893_v42 = vpop.xlane.xlu0 %892  ;;  %2605 = vrsqrt.f32 %v923_v34  ;;  %v909_v48 = vmul.f32 0.0078125, %v891_v40  ;;  %v950_v23 = vmul.f32 %v2596_v39, %v3384_v31  ;;  %v994_v57 = vadd.f32 %v3471_v0, %v971_v47 }
 0x2d3   : > { %v910_v49 = vmul.f32 0.0078125, %v893_v42  ;;  %2607 = vrsqrt.f32 %v924_v38  ;;  %v1007_v50 = vpack.c.bf16 %v993_v44, %v992_v21  ;;  %v972_v51 = vmul.f32 %v3464_v56, %v949_v43  ;;  %v2549_v44 = vld [vmem:[#allocation8 + $0x30] sm:$0xff]  }
 0x2d4   : > { %v2598_v52 = vpop.eup %2597  ;;  %v925_v45 = vadd.f32 1e-06, %v909_v48  ;;  %v973_v4 = vmul.f32 %v3464_v56, %v950_v23  ;;  %2389 = vmatprep.subr.bf16.mxu0 %v2549_v44 }
 0x2d5   : > { %v926_v55 = vadd.f32 1e-06, %v910_v49  ;;  %v2600_v58 = vpop.eup %2599  ;;  %v895_v62 = vpop.xlane.xlu1 %894  ;;  %2362 = vmatmul.mubr.bf16.vlgmr.msra.gmra.mrb[0].mxu1 %v1007_v50  ;;  %v995_v28 = vadd.f32 %v3471_v0, %v972_v51  ;;  %v951_v63 = vmul.f32 %v2598_v52, %v3391_v37  ;;  %2390 = vmatpush3.bf16.msra.mxu0 %v2549_v44 }
 0x2d6   : > { %2609 = vrsqrt.f32 %v925_v45  ;;  %v911_v31 = vmul.f32 0.0078125, %v895_v62  ;;  %v952_v6 = vmul.f32 %v2600_v58, %v3394_v29  ;;  %2417 = vmatpush3.bf16.msra.mxu1 %v3435_v2  ;;  %v996_v37 = vadd.f32 %v3471_v0, %v973_v4 }
 0x2d7   : > { %2611 = vrsqrt.f32 %v926_v55  ;;  %v1008_v7 = vpack.c.bf16 %v995_v28, %v994_v57  ;;  %v974_v8 = vmul.f32 %v3464_v56, %v951_v63  ;;  %2410 = vmatprep.subr.bf16.mxu1 %v3437_v17 }
 0x2d8   : > { %v2602_v10 = vpop.eup %2601  ;;  %v927_v9 = vadd.f32 1e-06, %v911_v31  ;;  %v975_v29 = vmul.f32 %v3464_v56, %v952_v6 }
 0x2d9   : > { %v2604_v1 = vpop.eup %2603  ;;  %2365 = vmatprep.mubr.bf16.mxu1 %v1008_v7  ;;  %v997_v12 = vadd.f32 %v3471_v0, %v974_v8  ;;  %v953_v14 = vmul.f32 %v2602_v10, %v3401_v46 }
 0x2da   : > { %2613 = vrsqrt.f32 %v927_v9  ;;  %v954_v2 = vmul.f32 %v2604_v1, %v3404_v41  ;;  %2418 = vmatpush3.bf16.msra.mxu1 %v3437_v17  ;;  %v998_v25 = vadd.f32 %v3471_v0, %v975_v29 }
 0x2db   : > { %v1009_v15 = vpack.c.bf16 %v997_v12, %v996_v37  ;;  %v976_v24 = vmul.f32 %v3464_v56, %v953_v14  ;;  %2411 = vmatprep.subr.bf16.mxu1 %v3443_v19 }
 0x2dc   : > { %v2606_v5 = vpop.eup %2605  ;;  %v977_v3 = vmul.f32 %v3464_v56, %v954_v2 }
 0x2dd   : > { %v2608_v18 = vpop.eup %2607  ;;  %2366 = vmatmul.mubr.bf16.gmra.mrb[4].mxu1 %v1009_v15  ;;  %v999_v26 = vadd.f32 %v3471_v0, %v976_v24  ;;  %v955_v46 = vmul.f32 %v2606_v5, %v3411_v53 }
 0x2de   : > { %v956_v41 = vmul.f32 %v2608_v18, %v3414_v35  ;;  %2419 = vmatpush3.bf16.msra.mxu1 %v3443_v19  ;;  %v1000_v13 = vadd.f32 %v3471_v0, %v977_v3 }
 0x2df   : > { %v1010_v17 = vpack.c.bf16 %v999_v26, %v998_v25  ;;  %v978_v27 = vmul.f32 %v3464_v56, %v955_v46  ;;  %2412 = vmatprep.subr.bf16.mxu1 %v3447_v59 }
 0x2e0   : > { %v2610_v20 = vpop.eup %2609  ;;  %v979_v36 = vmul.f32 %v3464_v56, %v956_v41 }
 0x2e1   : > { %v2612_v32 = vpop.eup %2611  ;;  %2369 = vmatprep.mubr.bf16.mxu1 %v1010_v17  ;;  %v1001_v33 = vadd.f32 %v3471_v0, %v978_v27  ;;  %v957_v53 = vmul.f32 %v2610_v20, %v3421_v60 }
 0x2e2   : > { %v958_v35 = vmul.f32 %v2612_v32, %v3424_v61  ;;  %2420 = vmatpush3.bf16.msra.mxu1 %v3447_v59  ;;  %v1002_v34 = vadd.f32 %v3471_v0, %v979_v36 }
 0x2e3   : > { %v1011_v19 = vpack.c.bf16 %v1001_v33, %v1000_v13  ;;  %v980_v16 = vmul.f32 %v3464_v56, %v957_v53  ;;  %2413 = vmatprep.subr.bf16.mxu1 %v3451_v22 }
 0x2e4   : > { %v2614_v30 = vpop.eup %2613  ;;  %v981_v60 = vmul.f32 %v3464_v56, %v958_v35 }
 0x2e5   : > { %2370 = vmatmul.mubr.bf16.gmra.mrb[8].mxu1 %v1011_v19  ;;  %v1003_v38 = vadd.f32 %v3471_v0, %v980_v16  ;;  %v959_v39 = vmul.f32 %v2614_v30, %v3431_v11  ;;  %v2550_v11 = vld [vmem:[#allocation8 + $0x38] sm:$0xff]  }
 0x2e6   : > { %2421 = vmatpush3.bf16.msra.mxu1 %v3451_v22  ;;  %v1004_v40 = vadd.f32 %v3471_v0, %v981_v60  ;;  %2391 = vmatprep.subr.bf16.mxu0 %v2550_v11  ;;  %v2076_v22 = vld [vmem:[%s3965_s6] ss:$0 sm:$0xff] }
 0x2e7   : > { %v1012_v61 = vpack.c.bf16 %v1003_v38, %v1002_v34  ;;  %v982_v59 = vmul.f32 %v3464_v56, %v959_v39  ;;  %2414 = vmatprep.subr.bf16.mxu1 %v3455_v54  ;;  %2392 = vmatpush3.bf16.msra.mxu0 %v2550_v11 }
 0x2e9   : > { %2373 = vmatprep.mubr.bf16.mxu1 %v1012_v61  ;;  %v1005_v42 = vadd.f32 %v3471_v0, %v982_v59 }
 0x2ea   : > { %2422 = vmatpush3.bf16.msra.mxu1 %v3455_v54 }
 0x2eb   : > { %v1013_v21 = vpack.c.bf16 %v1005_v42, %v1004_v40  ;;  %2415 = vmatprep.subr.bf16.mxu1 %v2549_v44 }
 0x2ed   : > { %2374 = vmatmul.mubr.bf16.gmra.mrb[12].mxu1 %v1013_v21 }
 0x2ee   : > { %2423 = vmatpush3.bf16.msra.mxu1 %v2549_v44 }
 0x2ef   : > { %2416 = vmatprep.subr.bf16.mxu1 %v2550_v11 }
 0x2f2   : > { %2424 = vmatpush3.bf16.msra.mxu1 %v2550_v11 }
 0x3a8   : > { %v2363_v56 = vpop.f32.mrb[0].mxu1 }
 0x3a9   : > { %v3532_v0 = vadd.f32 %v2363_v56, %v2076_v22  ;;  %v1119_v54 = vpop.f32.mrb[1].mxu1 }
 0x3aa   : > { %v2364_v43 = vpop.f32.mrb[2].mxu1  ;;  %v3534_v47 = vadd.f32 %v2076_v22, %v1119_v54 }
 0x3ab   : > { %v3536_v48 = vadd.f32 %v2364_v43, %v2076_v22  ;;  %v1122_v49 = vpop.f32.mrb[3].mxu1  ;;  %v1184_v23 = vmul.f32 %v3532_v0, %v3532_v0 }
 0x3ac   : > { %v3540_v50 = vadd.f32 %v2076_v22, %v1122_v49  ;;  %v1182_v55 = vmul.f32 %v3534_v47, %v3534_v47 }
 0x3ad   : > { %1202 = vadd.xlane.f32.xlu0 %v1184_v23  ;;  %v1185_v51 = vmul.f32 %v3536_v48, %v3536_v48  ;;  %v1471_v45 = vpack.c.bf16 %v3536_v48, %v3532_v0 }
 0x3ae   : > { %v1470_v52 = vpack.c.bf16 %v3540_v50, %v3534_v47  ;;  %v1183_v28 = vmul.f32 %v3540_v50, %v3540_v50 }
 0x3af   : > { %1204 = vadd.xlane.f32.xlu1 %v1185_v51 }
 0x3b0   : > { %v2367_v58 = vpop.f32.mrb[4].mxu1  ;;  %2393 = vmatprep.mubr.bf16.mxu0 %v1470_v52 }
 0x3b1   : > { %v3550_v62 = vadd.f32 %v2367_v58, %v2076_v22  ;;  %2394 = vmatmul.mubr.bf16.vlgmr.msra.gmra.mrb[16].mxu0 %v1471_v45  ;;  %1198 = vadd.xlane.f32.xlu0 %v1182_v55  ;;  %v1135_v57 = vpop.f32.mrb[5].mxu1  ;;  %v2117_v45 = vld [vmem:[%s3967_s8] ss:$0 sm:$0xff] }
 0x3b2   : > { %v2368_v63 = vpop.f32.mrb[6].mxu1  ;;  %v3554_v4 = vadd.f32 %v2076_v22, %v1135_v57 }
 0x3b3   : > { %v3556_v31 = vadd.f32 %v2368_v63, %v2076_v22  ;;  %1200 = vadd.xlane.f32.xlu1 %v1183_v28  ;;  %v1138_v6 = vpop.f32.mrb[7].mxu1  ;;  %v1188_v7 = vmul.f32 %v3550_v62, %v3550_v62 }
 0x3b4   : > { %v3560_v8 = vadd.f32 %v2076_v22, %v1138_v6  ;;  %v1186_v37 = vmul.f32 %v3554_v4, %v3554_v4 }
 0x3b5   : > { %1210 = vadd.xlane.f32.xlu0 %v1188_v7  ;;  %v1473_v1 = vpack.c.bf16 %v3556_v31, %v3550_v62 }
 0x3b6   : > { %v1187_v10 = vmul.f32 %v3560_v8, %v3560_v8  ;;  %v1472_v9 = vpack.c.bf16 %v3560_v8, %v3554_v4 }
 0x3b8   : > { %1208 = vadd.xlane.f32.xlu1 %v1187_v10  ;;  %v2371_v12 = vpop.f32.mrb[8].mxu1  ;;  %2397 = vmatprep.mubr.bf16.mxu0 %v1472_v9 }
 0x3b9   : > { %2398 = vmatmul.mubr.bf16.gmra.mrb[20].mxu0 %v1473_v1  ;;  %1206 = vadd.xlane.f32.xlu0 %v1186_v37  ;;  %v1151_v14 = vpop.f32.mrb[9].mxu1  ;;  %v3576_v18 = vadd.f32 %v2371_v12, %v2076_v22 }
 0x3ba   : > { %v2372_v29 = vpop.f32.mrb[10].mxu1  ;;  %v3572_v24 = vadd.f32 %v2076_v22, %v1151_v14 }
 0x3bb   : > { %v3570_v2 = vadd.f32 %v2372_v29, %v2076_v22  ;;  %v1154_v15 = vpop.f32.mrb[11].mxu1 }
 0x3bc   : > { %v3574_v5 = vadd.f32 %v2076_v22, %v1154_v15 }
 0x3bd   : > { %v1475_v26 = vpack.c.bf16 %v3570_v2, %v3576_v18 }
 0x3be   : > { %v1474_v25 = vpack.c.bf16 %v3574_v5, %v3572_v24 }
 0x3c0   : > { %v2375_v46 = vpop.f32.mrb[12].mxu1  ;;  %2401 = vmatprep.mubr.bf16.mxu1 %v1474_v25 }
 0x3c1   : > { %v1167_v3 = vpop.f32.mrb[13].mxu1  ;;  %2402 = vmatmul.mubr.bf16.vlgmr.msra.gmra.mrb[16].mxu1 %v1475_v26  ;;  %v3588_v13 = vadd.f32 %v2375_v46, %v2076_v22 }
 0x3c2   : > { %v2376_v41 = vpop.f32.mrb[14].mxu1  ;;  %v3584_v20 = vadd.f32 %v2076_v22, %v1167_v3 }
 0x3c3   : > { %v3582_v17 = vadd.f32 %v2376_v41, %v2076_v22  ;;  %v1170_v27 = vpop.f32.mrb[15].mxu1 }
 0x3c4   : > { %v3586_v32 = vadd.f32 %v2076_v22, %v1170_v27 }
 0x3c5   : > { %v1477_v53 = vpack.c.bf16 %v3582_v17, %v3588_v13 }
 0x3c6   : > { %v1476_v33 = vpack.c.bf16 %v3586_v32, %v3584_v20 }
 0x3c8   : > { %2405 = vmatprep.mubr.bf16.mxu1 %v1476_v33 }
 0x3c9   : > { %2406 = vmatmul.mubr.bf16.gmra.mrb[20].mxu1 %v1477_v53 }
 0x43a   : > { %v1203_v36 = vpop.xlane.xlu0 %1202 }
 0x43b   : > { %v1232_v35 = vmax.f32 %v1203_v36, 1e-30 }
 0x43c   : > { %v1205_v19 = vpop.xlane.xlu1 %1204 }
 0x43d   : > { %2615 = vrsqrt.f32 %v1232_v35  ;;  %v1233_v16 = vmax.f32 %v1205_v19, 1e-30 }
 0x43e   : > { %v1199_v30 = vpop.xlane.xlu0 %1198 }
 0x43f   : > { %2617 = vrsqrt.f32 %v1233_v16  ;;  %v1230_v34 = vmax.f32 %v1199_v30, 1e-30 }
 0x440   : > { %v1201_v38 = vpop.xlane.xlu1 %1200 }
 0x441   : > { %2619 = vrsqrt.f32 %v1230_v34  ;;  %v1231_v39 = vmax.f32 %v1201_v38, 1e-30 }
 0x442   : > { %v3594_v60 = vpop.xlane.xlu0 %1210 }
 0x443   : > { %2621 = vrsqrt.f32 %v1231_v39  ;;  %v1190_v39 = vmul.f32 %v3572_v24, %v3572_v24 }
 0x445   : > { %v1209_v61 = vpop.xlane.xlu1 %1208 }
 0x446   : > { %v1235_v59 = vmax.f32 %v1209_v61, 1e-30  ;;  %v1207_v40 = vpop.xlane.xlu0 %1206  ;;  %v1189_v61 = vmul.f32 %v3556_v31, %v3556_v31 }
 0x447   : > { %v2616_v42 = vpop.eup %2615  ;;  %v1234_v21 = vmax.f32 %v1207_v40, 1e-30  ;;  %v1191_v40 = vmul.f32 %v3574_v5, %v3574_v5 }
 0x448   : > { %2623 = vrsqrt.f32 %v1235_v59  ;;  %v3597_v11 = vmul.f32 %v2616_v42, %v3532_v0  ;;  %v1192_v59 = vmul.f32 %v3576_v18, %v3576_v18  ;;  %v1194_v42 = vmul.f32 %v3584_v20, %v3584_v20 }
 0x449   : > { %v2618_v44 = vpop.eup %2617  ;;  %2625 = vrsqrt.f32 %v1234_v21  ;;  %v1193_v21 = vmul.f32 %v3570_v2, %v3570_v2 }
 0x44a   : > { %v3600_v22 = vmul.f32 %v2618_v44, %v3536_v48  ;;  %v1196_v44 = vmul.f32 %v3588_v13, %v3588_v13 }
 0x44b   : > { %v2620_v56 = vpop.eup %2619 }
 0x44c   : > { %v2179_v54 = vpack.c.bf16 %v3600_v22, %v3597_v11  ;;  %v3605_v49 = vmul.f32 %v2620_v56, %v3534_v47  ;;  %v1195_v56 = vmul.f32 %v3586_v32, %v3586_v32 }
 0x44d   : > { %v2622_v43 = vpop.eup %2621 }
 0x44e   : > { %v3608_v23 = vmul.f32 %v2622_v43, %v3540_v50  ;;  %2251 = vst [vmem:[%s3611_s26 + $0x8] sm:$0xff] %v2179_v54   ;;  %v1197_v54 = vmul.f32 %v3582_v17, %v3582_v17  ;;  %v1236_v43 = vmax.f32 %v3594_v60, 1e-30 }
 0x450   : > { %v2174_v0 = vpack.c.bf16 %v3608_v23, %v3605_v49  ;;  %2627 = vrsqrt.f32 %v1236_v43 }
 0x452   : > { %v2624_v48 = vpop.eup %2623  ;;  %2175 = vst [vmem:[%s3611_s26] sm:$0xff] %v2174_v0  }
 0x453   : > { %v2626_v51 = vpop.eup %2625  ;;  %v3618_v52 = vmul.f32 %v2624_v48, %v3560_v8 }
 0x454   : > { %v3621_v47 = vmul.f32 %v2626_v51, %v3554_v4 }
 0x456   : > { %v2184_v50 = vpack.c.bf16 %v3618_v52, %v3621_v47 }
 0x458   : > { %2252 = vst [vmem:[%s3611_s26 + $0x10] sm:$0xff] %v2184_v50  }
 0x45a   : > { %v2628_v0 = vpop.eup %2627 }
 0x45b   : > { %v3703_v48 = vmul.f32 %v2628_v0, %v3550_v62 }
 0x484   : > { %v2395_v55 = vpop.f32.mrb[16].mxu0 }
 0x485   : > { %v3629_v58 = vadd.f32 %v2395_v55, %v2117_v45  ;;  %v1583_v57 = vpop.f32.mrb[17].mxu0 }
 0x486   : > { %v2396_v28 = vpop.f32.mrb[18].mxu0  ;;  %v3634_v4 = vadd.f32 %v2117_v45, %v1583_v57 }
 0x487   : > { %v3631_v63 = vadd.f32 %v2396_v28, %v2117_v45  ;;  %v1586_v6 = vpop.f32.mrb[19].mxu0  ;;  %1650 = vmax.xlane.f32.xlu0 %v3629_v58 }
 0x488   : > { %v3637_v7 = vadd.f32 %v2117_v45, %v1586_v6 }
 0x489   : > { %1652 = vmax.xlane.f32.xlu1 %v3631_v63 }
 0x48b   : > { %1646 = vmax.xlane.f32.xlu0 %v3634_v4 }
 0x48c   : > { %v2399_v8 = vpop.f32.mrb[20].mxu0 }
 0x48d   : > { %v3640_v10 = vadd.f32 %v2399_v8, %v2117_v45  ;;  %1648 = vmax.xlane.f32.xlu1 %v3637_v7  ;;  %v1599_v9 = vpop.f32.mrb[21].mxu0 }
 0x48e   : > { %v2400_v1 = vpop.f32.mrb[22].mxu0  ;;  %v3646_v14 = vadd.f32 %v2117_v45, %v1599_v9 }
 0x48f   : > { %v3643_v37 = vadd.f32 %v2400_v1, %v2117_v45  ;;  %v1602_v12 = vpop.f32.mrb[23].mxu0  ;;  %1658 = vmax.xlane.f32.xlu0 %v3640_v10 }
 0x490   : > { %v3649_v29 = vadd.f32 %v2117_v45, %v1602_v12 }
 0x491   : > { %1660 = vmax.xlane.f32.xlu1 %v3643_v37 }
 0x493   : > { %1654 = vmax.xlane.f32.xlu0 %v3646_v14 }
 0x494   : > { %v2403_v15 = vpop.f32.mrb[16].mxu1 }
 0x495   : > { %v3652_v25 = vadd.f32 %v2403_v15, %v2117_v45  ;;  %1656 = vmax.xlane.f32.xlu1 %v3649_v29  ;;  %v1615_v26 = vpop.f32.mrb[17].mxu1 }
 0x496   : > { %v2404_v46 = vpop.f32.mrb[18].mxu1  ;;  %v3658_v27 = vadd.f32 %v2117_v45, %v1615_v26 }
 0x497   : > { %v3655_v3 = vadd.f32 %v2404_v46, %v2117_v45  ;;  %1666 = vmax.xlane.f32.xlu0 %v3652_v25  ;;  %v1618_v41 = vpop.f32.mrb[19].mxu1 }
 0x498   : > { %v3661_v33 = vadd.f32 %v2117_v45, %v1618_v41 }
 0x499   : > { %1668 = vmax.xlane.f32.xlu1 %v3655_v3 }
 0x49b   : > { %1662 = vmax.xlane.f32.xlu0 %v3658_v27 }
 0x49c   : > { %v2407_v53 = vpop.f32.mrb[20].mxu1 }
 0x49d   : > { %v3664_v36 = vadd.f32 %v2407_v53, %v2117_v45  ;;  %1664 = vmax.xlane.f32.xlu1 %v3661_v33  ;;  %v1631_v35 = vpop.f32.mrb[21].mxu1 }
 0x49e   : > { %v2408_v19 = vpop.f32.mrb[22].mxu1  ;;  %v3670_v34 = vadd.f32 %v2117_v45, %v1631_v35 }
 0x49f   : > { %v3667_v16 = vadd.f32 %v2408_v19, %v2117_v45  ;;  %1674 = vmax.xlane.f32.xlu0 %v3664_v36  ;;  %v1634_v30 = vpop.f32.mrb[23].mxu1 }
 0x4a0   : > { %v3673_v38 = vadd.f32 %v2117_v45, %v1634_v30 }
 0x4a1   : > { %1676 = vmax.xlane.f32.xlu1 %v3667_v16 }
 0x4a3   : > { %1670 = vmax.xlane.f32.xlu0 %v3670_v34 }
 0x4a5   : > { %1672 = vmax.xlane.f32.xlu1 %v3673_v38 }
 0x4a7   : > { %1214 = vadd.xlane.f32.xlu0 %v1190_v39 }
 0x4a9   : > { %1212 = vadd.xlane.f32.xlu1 %v1189_v61 }
 0x4ab   : > { %1218 = vadd.xlane.f32.xlu0 %v1192_v59 }
 0x4ad   : > { %1216 = vadd.xlane.f32.xlu1 %v1191_v40 }
 0x4af   : > { %1222 = vadd.xlane.f32.xlu0 %v1194_v42 }
 0x4b1   : > { %1220 = vadd.xlane.f32.xlu1 %v1193_v21 }
 0x4b3   : > { %1226 = vadd.xlane.f32.xlu0 %v1196_v44 }
 0x4b5   : > { %1224 = vadd.xlane.f32.xlu1 %v1195_v56 }
 0x4b9   : > { %1228 = vadd.xlane.f32.xlu1 %v1197_v54 }
 0x4e0   : > { %1358 = vxpose.xlu0.b32.start [1/16] %v3605_v49, 128 }
 0x4e4   : > { %1359 = vxpose.xlu0.b32.cont [2/16] %v3608_v23, 128 }
 0x4e8   : > { %1360 = vxpose.xlu0.b32.cont [3/16] %v3597_v11, 128 }
 0x4ec   : > { %1361 = vxpose.xlu0.b32.cont [4/16] %v3600_v22, 128 }
 0x4f0   : > { %1362 = vxpose.xlu0.b32.cont [5/16] %v3621_v47, 128 }
 0x4f4   : > { %1363 = vxpose.xlu0.b32.cont [6/16] %v3618_v52, 128 }
 0x4f8   : > { %1364 = vxpose.xlu0.b32.cont [7/16] %v3703_v48, 128 }
 0x514   : > { %v1651_v49 = vpop.xlane.xlu0 %1650 }
 0x515   : > { %v3707_v23 = vsub.f32 %v3629_v58, %v1651_v49 }
 0x516   : > { %v1653_v60 = vpop.xlane.xlu1 %1652 }
 0x517   : > { %v1698_v11 = vmul.f32 1.442695, %v3707_v23  ;;  %v3711_v22 = vsub.f32 %v3631_v63, %v1653_v60 }
 0x518   : > { %v1647_v51 = vpop.xlane.xlu0 %1646 }
 0x519   : > { %2629 = vpow2.f32 %v1698_v11  ;;  %v3714_v47 = vsub.f32 %v3634_v4, %v1647_v51  ;;  %v1700_v45 = vmul.f32 1.442695, %v3711_v22 }
 0x51a   : > { %v1649_v52 = vpop.xlane.xlu1 %1648 }
 0x51b   : > { %v1694_v62 = vmul.f32 1.442695, %v3714_v47  ;;  %v3719_v55 = vsub.f32 %v3637_v7, %v1649_v52 }
 0x51c   : > { %v1659_v50 = vpop.xlane.xlu0 %1658 }
 0x51d   : > { %2631 = vpow2.f32 %v1694_v62  ;;  %v1696_v28 = vmul.f32 1.442695, %v3719_v55  ;;  %v3723_v63 = vsub.f32 %v3640_v10, %v1659_v50 }
 0x51e   : > { %v1661_v58 = vpop.xlane.xlu1 %1660  ;;  %2633 = vpow2.f32 %v1700_v45 }
 0x51f   : > { %2635 = vpow2.f32 %v1696_v28  ;;  %v1706_v9 = vmul.f32 1.442695, %v3723_v63  ;;  %v3730_v26 = vsub.f32 %v3643_v37, %v1661_v58 }
 0x520   : > { %v1655_v57 = vpop.xlane.xlu0 %1654 }
 0x521   : > { %v3727_v1 = vsub.f32 %v3646_v14, %v1655_v57  ;;  %2637 = vpow2.f32 %v1706_v9  ;;  %v1708_v35 = vmul.f32 1.442695, %v3730_v26 }
 0x522   : > { %v1657_v6 = vpop.xlane.xlu1 %1656 }
 0x523   : > { %v2630_v4 = vpop.eup %2629  ;;  %v1702_v10 = vmul.f32 1.442695, %v3727_v1  ;;  %v3735_v14 = vsub.f32 %v3649_v29, %v1657_v6 }
 0x524   : > { %1730 = vadd.xlane.f32.xlu1 %v2630_v4  ;;  %v1667_v8 = vpop.xlane.xlu0 %1666 }
 0x525   : > { %2639 = vpow2.f32 %v1702_v10  ;;  %v3740_v39 = vsub.f32 %v3652_v25, %v1667_v8  ;;  %v1704_v61 = vmul.f32 1.442695, %v3735_v14 }
 0x526   : > { %v1669_v7 = vpop.xlane.xlu1 %1668  ;;  %2641 = vpow2.f32 %v1708_v35 }
 0x527   : > { %v2632_v12 = vpop.eup %2631  ;;  %v1714_v42 = vmul.f32 1.442695, %v3740_v39  ;;  %2643 = vpow2.f32 %v1704_v61  ;;  %v3750_v43 = vsub.f32 %v3655_v3, %v1669_v7 }
 0x528   : > { %1726 = vadd.xlane.f32.xlu1 %v2632_v12  ;;  %v1663_v15 = vpop.xlane.xlu0 %1662  ;;  %v2634_v41 = vpop.eup %2633 }
 0x529   : > { %v2636_v30 = vpop.eup %2635  ;;  %v3747_v21 = vsub.f32 %v3658_v27, %v1663_v15  ;;  %2645 = vpow2.f32 %v1714_v42  ;;  %v1716_v52 = vmul.f32 1.442695, %v3750_v43 }
 0x52a   : > { %v1665_v46 = vpop.xlane.xlu1 %1664 }
 0x52b   : > { %v2638_v40 = vpop.eup %2637  ;;  %v1710_v0 = vmul.f32 1.442695, %v3747_v21  ;;  %v3755_v62 = vsub.f32 %v3661_v33, %v1665_v46 }
 0x52c   : > { %1732 = vadd.xlane.f32.xlu1 %v2634_v41  ;;  %v1675_v53 = vpop.xlane.xlu0 %1674 }
 0x52d   : > { %v1712_v28 = vmul.f32 1.442695, %v3755_v62  ;;  %v3759_v6 = vsub.f32 %v3664_v36, %v1675_v53 }
 0x52e   : > { %v3737_v19 = vpop.xlane.xlu1 %1676 }
 0x52f   : > { %v2640_v56 = vpop.eup %2639  ;;  %v1722_v15 = vmul.f32 1.442695, %v3759_v6 }
 0x530   : > { %1728 = vadd.xlane.f32.xlu1 %v2636_v30  ;;  %v1671_v37 = vpop.xlane.xlu0 %1670  ;;  %v2642_v11 = vpop.eup %2641 }
 0x531   : > { %v2644_v45 = vpop.eup %2643  ;;  %v3764_v36 = vsub.f32 %v3670_v34, %v1671_v37 }
 0x532   : > { %v3743_v59 = vpop.xlane.xlu1 %1672 }
 0x533   : > { %v2646_v8 = vpop.eup %2645  ;;  %v1718_v34 = vmul.f32 1.442695, %v3764_v36  ;;  %v3773_v37 = vsub.f32 %v3673_v38, %v3743_v59 }
 0x534   : > { %1738 = vadd.xlane.f32.xlu1 %v2638_v40  ;;  %v1215_v29 = vpop.xlane.xlu0 %1214 }
 0x535   : > { %v1238_v25 = vmax.f32 %v1215_v29, 1e-30  ;;  %v1720_v38 = vmul.f32 1.442695, %v3773_v37 }
 0x536   : > { %v1213_v44 = vpop.xlane.xlu1 %1212 }
 0x537   : > { %v1237_v54 = vmax.f32 %v1213_v44, 1e-30 }
 0x538   : > { %1734 = vadd.xlane.f32.xlu1 %v2640_v56  ;;  %v1219_v49 = vpop.xlane.xlu0 %1218 }
 0x539   : > { %2647 = vrsqrt.f32 %v1237_v54  ;;  %v1240_v27 = vmax.f32 %v1219_v49, 1e-30 }
 0x53a   : > { %v1217_v60 = vpop.xlane.xlu1 %1216  ;;  %2649 = vrsqrt.f32 %v1238_v25  ;;  %v3780_v25 = vsub.f32 %v3667_v16, %v3737_v19 }
 0x53b   : > { %v1239_v51 = vmax.f32 %v1217_v60, 1e-30  ;;  %2651 = vpow2.f32 %v1710_v0 }
 0x53c   : > { %1740 = vadd.xlane.f32.xlu1 %v2642_v11  ;;  %v1223_v50 = vpop.xlane.xlu0 %1222  ;;  %v1724_v60 = vmul.f32 1.442695, %v3780_v25 }
 0x53d   : > { %2653 = vrsqrt.f32 %v1239_v51  ;;  %v1242_v58 = vmax.f32 %v1223_v50, 1e-30 }
 0x53e   : > { %v1221_v3 = vpop.xlane.xlu1 %1220  ;;  %2655 = vrsqrt.f32 %v1240_v27 }
 0x53f   : > { %v1241_v57 = vmax.f32 %v1221_v3, 1e-30  ;;  %2657 = vpow2.f32 %v1716_v52 }
 0x540   : > { %1736 = vadd.xlane.f32.xlu1 %v2644_v45  ;;  %v1227_v4 = vpop.xlane.xlu0 %1226 }
 0x541   : > { %2659 = vrsqrt.f32 %v1241_v57  ;;  %v1244_v7 = vmax.f32 %v1227_v4, 1e-30 }
 0x542   : > { %v1225_v33 = vpop.xlane.xlu1 %1224  ;;  %2661 = vrsqrt.f32 %v1242_v58 }
 0x543   : > { %v2648_v9 = vpop.eup %2647  ;;  %v1243_v12 = vmax.f32 %v1225_v33, 1e-30  ;;  %2663 = vpow2.f32 %v1712_v28 }
 0x544   : > { %1746 = vadd.xlane.f32.xlu1 %v2646_v8  ;;  %v1269_v10 = vmul.f32 %v2648_v9, %v3556_v31  ;;  %v2650_v46 = vpop.eup %2649 }
 0x545   : > { %2665 = vrsqrt.f32 %v1243_v12  ;;  %v2652_v41 = vpop.eup %2651  ;;  %v1270_v40 = vmul.f32 %v2650_v46, %v3572_v24 }
 0x546   : > { %v1229_v53 = vpop.xlane.xlu1 %1228  ;;  %v2189_v35 = vpack.c.bf16 %v1269_v10, %v3703_v48  ;;  %1365 = vxpose.xlu0.b32.cont [8/16] %v1269_v10, 128  ;;  %2667 = vrsqrt.f32 %v1244_v7 }
 0x547   : > { %v2654_v30 = vpop.eup %2653  ;;  %v1245_v61 = vmax.f32 %v1229_v53, 1e-30  ;;  %2669 = vpow2.f32 %v1722_v15 }
 0x548   : > { %2253 = vst [vmem:[%s3611_s26 + $0x18] sm:$0xff] %v2189_v35   ;;  %1742 = vadd.xlane.f32.xlu1 %v2652_v41  ;;  %v1271_v31 = vmul.f32 %v2654_v30, %v3574_v5  ;;  %v2656_v42 = vpop.eup %2655 }
 0x549   : > { %2671 = vrsqrt.f32 %v1245_v61  ;;  %v2658_v48 = vpop.eup %2657  ;;  %v1272_v56 = vmul.f32 %v2656_v42, %v3576_v18 }
 0x54a   : > { %1366 = vxpose.xlu0.b32.cont [9/16] %v1270_v40, 128  ;;  %v2194_v29 = vpack.c.bf16 %v1271_v31, %v1270_v40  ;;  %2673 = vpow2.f32 %v1718_v34 }
 0x54b   : > { %v2660_v44 = vpop.eup %2659  ;;  %2675 = vpow2.f32 %v1720_v38 }
 0x54c   : > { %1748 = vadd.xlane.f32.xlu1 %v2658_v48  ;;  %2254 = vst [vmem:[%s3611_s26 + $0x20] sm:$0xff] %v2194_v29   ;;  %v1273_v24 = vmul.f32 %v2660_v44, %v3570_v2  ;;  %v2662_v5 = vpop.eup %2661  ;;  %2677 = vpow2.f32 %v1724_v60 }
 0x54d   : > { %v2664_v59 = vpop.eup %2663  ;;  %v1274_v49 = vmul.f32 %v2662_v5, %v3584_v20 }
 0x54e   : > { %1367 = vxpose.xlu0.b32.cont [10/16] %v1271_v31, 128  ;;  %v2199_v54 = vpack.c.bf16 %v1273_v24, %v1272_v56 }
 0x54f   : > { %v2666_v0 = vpop.eup %2665 }
 0x550   : > { %1744 = vadd.xlane.f32.xlu1 %v2664_v59  ;;  %2255 = vst [vmem:[%s3611_s26 + $0x28] sm:$0xff] %v2199_v54   ;;  %v1275_v18 = vmul.f32 %v2666_v0, %v3586_v32  ;;  %v2668_v2 = vpop.eup %2667 }
 0x551   : > { %v2670_v16 = vpop.eup %2669  ;;  %v1276_v27 = vmul.f32 %v2668_v2, %v3588_v13 }
 0x552   : > { %1368 = vxpose.xlu0.b32.cont [11/16] %v1272_v56, 128  ;;  %v2204_v19 = vpack.c.bf16 %v1275_v18, %v1274_v49 }
 0x553   : > { %v2672_v11 = vpop.eup %2671 }
 0x554   : > { %1754 = vadd.xlane.f32.xlu1 %v2670_v16  ;;  %2256 = vst [vmem:[%s3611_s26 + $0x30] sm:$0xff] %v2204_v19   ;;  %v1277_v51 = vmul.f32 %v2672_v11, %v3582_v17  ;;  %v2674_v32 = vpop.eup %2673 }
 0x555   : > { %v2676_v52 = vpop.eup %2675 }
 0x556   : > { %1369 = vxpose.xlu0.b32.cont [12/16] %v1273_v24, 128  ;;  %v2209_v20 = vpack.c.bf16 %v1277_v51, %v1276_v27  ;;  %v2678_v50 = vpop.eup %2677 }
 0x558   : > { %1750 = vadd.xlane.f32.xlu1 %v2674_v32  ;;  %2257 = vst [vmem:[%s3611_s26 + $0x38] sm:$0xff] %v2209_v20   ;;  %s2831_s26 = scalar_lea.vmem %s2830_s16, 2048 }
 0x559   : > { %p2833_p1 = scmp.lt.s32.totalorder %s2831_s26, %s2825_s30 }
 0x55a   : > { %1370 = vxpose.xlu0.b32.cont [13/16] %v1274_v49, 128 }
 0x55b   : > { %p2834_p2 = por %p2833_p1, %p2832_p11 }
 0x55c   : > { %1752 = vadd.xlane.f32.xlu1 %v2676_v52 }
 0x55d   : > { %p2835_p4 = pnand %p2834_p2, %p2828_p7 }
 0x55e   : > { %1371 = vxpose.xlu0.b32.cont [14/16] %v1275_v18, 128 }
 0x560   : > { %1756 = vadd.xlane.f32.xlu1 %v2678_v50 }
 0x562   : > { %1372 = vxpose.xlu0.b32.cont [15/16] %v1276_v27, 128 }
 0x566   : > { %1373 = vxpose.xlu0.b32.end [16/16] %v1277_v51, 128 }
 0x567   : > { %2838 = shalt.err (!%p2835_p4)
}
 0x568   : > { %s2839_s13 = scalar_lea.hbm %s3798_s15, 1024  ;;  %s2843_s23 = scalar_lea.hbm %s4000_s14, 3072 }
 0x569   : > { %p2840_p9 = scmp.ne.s32.totalorder %s3798_s15, %s2839_s13  ;;  %p2844_p8 = scmp.lt.u32.totalorder %s3798_s15, %s4000_s14 }
 0x56a   : > { %p2845_p12 = scmp.lt.u32.totalorder %s2843_s23, %s2839_s13  ;;  %p2847_p0 = scmp.lt.u32.totalorder %s2839_s13, %s3798_s15 }
 0x56b   : > { %p2841_p13 = pnand %p2840_p9, %p3190_p5 }
 0x56c   : > { %p2846_p6 = por %p2845_p12, %p2844_p8 }
 0x56d   : > { %p2842_p10 = pneg %p2841_p13 }
 0x56e   : > { %p2848_p3 = por %p2847_p0, %p2846_p6 }
 0x570   : > { %p2849_p7 = pnand %p2848_p3, %p2842_p10 }
 0x572   : > { %2852 = shalt.err (!%p2849_p7)
}
 0x573   : > { %s3980_s30 = smov 64   ;;  %s2969_s16 = smov 4  }
 0x574   : > { %2439 = dma.vmem_to_hbm [thread:$0]  (%p3190_p5), %s3793_s9, 1024, %s3798_s15, %s1823_s22, %s3980_s30, %s3980_s30, %s2969_s16  }
 0x575   : > { %s3828_s26 = scalar_lea.vmem [#allocation11], %s3244_s29  ;;  %s2056_s9 = sshll.u32 %s3241_s10, 7 }
 0x576   : > { %s3834_s29 = scalar_lea.vmem [#allocation13], %s2056_s9  ;;  %s1861_s10 = sshll.u32 %s3828_s26, 4  ;;  %s3863_s10 = int_to_ptr.vmem [resolvable:$true] %s1861_s10 }
 0x577   : > { %s1827_s15 = sand.u32 1, %s3056_s21   ;;  %s2131_s22 = sshll.u32 %s3056_s21, 6 }
 0x578   : > { %s4001_s27 = sld [smem:[#allocation22_spill]]  ;;  %s3873_s25 = scalar_lea.sflag [#allocation12], %s1827_s15 }
 0x579   : > { %s2853_s28 = scalar_lea.vmem %s3863_s10, 1024  ;;  %s2970_s9 = smov [#allocation11]  }
 0x57a   : > { %p2854_p11 = scmp.ne.s32.totalorder %s3863_s10, %s2853_s28  ;;  %s2857_s30 = sshll.u32 %s2970_s9, 4  ;;  %s2858_s30 = int_to_ptr.vmem [resolvable:$false] %s2857_s30 }
 0x57b   : > { %s2859_s13 = scalar_lea.vmem %s2858_s30, 2048  ;;  %p2860_p4 = scmp.lt.s32.totalorder %s3863_s10, %s2858_s30 }
 0x57c   : > { %p2855_p1 = pnand %p2854_p11, %p3190_p5  ;;  %p2861_p9 = scmp.lt.s32.totalorder %s2859_s13, %s2853_s28 }
 0x57e   : > { %s3869_s23 = scalar_lea.hbm %s4001_s27, %s2131_s22  ;;  %p2856_p2 = pneg %p2855_p1 }
 0x57f   : > { %p2862_p13 = por %p2861_p9, %p2860_p4 }
 0x581   : > { %p2863_p10 = pnand %p2862_p13, %p2856_p2 }
 0x5aa   : > { %v1374_v17 = vpop.trf.xlu0 }
 0x5ae   : > { %v1375_v13 = vpop.trf.xlu0 }
 0x5af   : > { %v2214_v3 = vpack.c.bf16 %v1375_v13, %v1374_v17 }
 0x5b1   : > { %v1731_v45 = vpop.xlane.xlu1 %1730  ;;  %2215 = vst [vmem:[%s3828_s26] sm:$0xff] %v2214_v3  }
 0x5b2   : > { %2679 = vlog2.f32 %v1731_v45  ;;  %v1376_v58 = vpop.trf.xlu0 }
 0x5b5   : > { %v1727_v57 = vpop.xlane.xlu1 %1726 }
 0x5b6   : > { %2681 = vlog2.f32 %v1727_v57  ;;  %v1377_v28 = vpop.trf.xlu0 }
 0x5b7   : > { %v2219_v4 = vpack.c.bf16 %v1377_v28, %v1376_v58 }
 0x5b9   : > { %v1733_v8 = vpop.xlane.xlu1 %1732  ;;  %2258 = vst [vmem:[%s3828_s26 + $0x8] sm:$0xff] %v2219_v4  }
 0x5ba   : > { %2683 = vlog2.f32 %v1733_v8  ;;  %v1378_v33 = vpop.trf.xlu0 }
 0x5bc   : > { %v2680_v9 = vpop.eup %2679 }
 0x5bd   : > { %v1763_v7 = vmul.f32 0.6931472, %v2680_v9  ;;  %v1729_v12 = vpop.xlane.xlu1 %1728 }
 0x5be   : > { %2685 = vlog2.f32 %v1729_v12  ;;  %v1379_v15 = vpop.trf.xlu0 }
 0x5bf   : > { %v1792_v10 = vsub.f32 %v3707_v23, %v1763_v7  ;;  %v2224_v46 = vpack.c.bf16 %v1379_v15, %v1378_v33 }
 0x5c0   : > { %v2682_v41 = vpop.eup %2681 }
 0x5c1   : > { %1808 = vst [vmem:[%s3834_s29 + $0x10] sm:$0xff] %v1792_v10  ;;  %v1759_v53 = vmul.f32 0.6931472, %v2682_v41  ;;  %v1739_v35 = vpop.xlane.xlu1 %1738  ;;  %2259 = vst [vmem:[%s3828_s26 + $0x10] sm:$0xff] %v2224_v46  }
 0x5c2   : > { %2687 = vlog2.f32 %v1739_v35  ;;  %v1380_v30 = vpop.trf.xlu0 }
 0x5c3   : > { %v1790_v61 = vsub.f32 %v3714_v47, %v1759_v53 }
 0x5c4   : > { %v2684_v40 = vpop.eup %2683 }
 0x5c5   : > { %1806 = vst [vmem:[%s3834_s29] sm:$0xff] %v1790_v61  ;;  %v1765_v23 = vmul.f32 0.6931472, %v2684_v40  ;;  %v1735_v31 = vpop.xlane.xlu1 %1734 }
 0x5c6   : > { %2689 = vlog2.f32 %v1735_v31  ;;  %v1381_v42 = vpop.trf.xlu0 }
 0x5c7   : > { %v1793_v34 = vsub.f32 %v3711_v22, %v1765_v23  ;;  %v2229_v48 = vpack.c.bf16 %v1381_v42, %v1380_v30 }
 0x5c8   : > { %v2686_v29 = vpop.eup %2685 }
 0x5c9   : > { %1809 = vst [vmem:[%s3834_s29 + $0x18] sm:$0xff] %v1793_v34  ;;  %v1761_v44 = vmul.f32 0.6931472, %v2686_v29  ;;  %v1741_v56 = vpop.xlane.xlu1 %1740  ;;  %2260 = vst [vmem:[%s3828_s26 + $0x18] sm:$0xff] %v2229_v48  }
 0x5ca   : > { %2691 = vlog2.f32 %v1741_v56  ;;  %v1382_v24 = vpop.trf.xlu0 }
 0x5cb   : > { %v1791_v47 = vsub.f32 %v3719_v55, %v1761_v44 }
 0x5cc   : > { %v2688_v5 = vpop.eup %2687 }
 0x5cd   : > { %1807 = vst [vmem:[%s3834_s29 + $0x8] sm:$0xff] %v1791_v47  ;;  %v1771_v38 = vmul.f32 0.6931472, %v2688_v5  ;;  %v1737_v59 = vpop.xlane.xlu1 %1736 }
 0x5ce   : > { %2693 = vlog2.f32 %v1737_v59  ;;  %v1383_v54 = vpop.trf.xlu0 }
 0x5cf   : > { %v1796_v22 = vsub.f32 %v3723_v63, %v1771_v38  ;;  %v2234_v0 = vpack.c.bf16 %v1383_v54, %v1382_v24 }
 0x5d0   : > { %v2690_v49 = vpop.eup %2689 }
 0x5d1   : > { %1812 = vst [vmem:[%s3834_s29 + $0x30] sm:$0xff] %v1796_v22  ;;  %v1767_v18 = vmul.f32 0.6931472, %v2690_v49  ;;  %v1747_v2 = vpop.xlane.xlu1 %1746  ;;  %2261 = vst [vmem:[%s3828_s26 + $0x20] sm:$0xff] %v2234_v0  }
 0x5d2   : > { %2695 = vlog2.f32 %v1747_v2  ;;  %v1384_v60 = vpop.trf.xlu0 }
 0x5d3   : > { %v1794_v55 = vsub.f32 %v3727_v1, %v1767_v18 }
 0x5d4   : > { %v2692_v16 = vpop.eup %2691 }
 0x5d5   : > { %1810 = vst [vmem:[%s3834_s29 + $0x20] sm:$0xff] %v1794_v55  ;;  %v1773_v19 = vmul.f32 0.6931472, %v2692_v16  ;;  %v1743_v11 = vpop.xlane.xlu1 %1742 }
 0x5d6   : > { %2697 = vlog2.f32 %v1743_v11  ;;  %v1385_v27 = vpop.trf.xlu0 }
 0x5d7   : > { %v1797_v63 = vsub.f32 %v3730_v26, %v1773_v19  ;;  %v2239_v51 = vpack.c.bf16 %v1385_v27, %v1384_v60 }
 0x5d8   : > { %v2694_v20 = vpop.eup %2693 }
 0x5d9   : > { %1813 = vst [vmem:[%s3834_s29 + $0x38] sm:$0xff] %v1797_v63  ;;  %v1769_v32 = vmul.f32 0.6931472, %v2694_v20  ;;  %v1749_v52 = vpop.xlane.xlu1 %1748  ;;  %2262 = vst [vmem:[%s3828_s26 + $0x28] sm:$0xff] %v2239_v51  }
 0x5da   : > { %2699 = vlog2.f32 %v1749_v52  ;;  %v1386_v50 = vpop.trf.xlu0 }
 0x5db   : > { %v1795_v1 = vsub.f32 %v3735_v14, %v1769_v32 }
 0x5dc   : > { %v2696_v17 = vpop.eup %2695 }
 0x5dd   : > { %1811 = vst [vmem:[%s3834_s29 + $0x28] sm:$0xff] %v1795_v1  ;;  %v1779_v13 = vmul.f32 0.6931472, %v2696_v17  ;;  %v1745_v3 = vpop.xlane.xlu1 %1744 }
 0x5de   : > { %2701 = vlog2.f32 %v1745_v3  ;;  %v1387_v26 = vpop.trf.xlu0 }
 0x5df   : > { %v1800_v45 = vsub.f32 %v3740_v39, %v1779_v13  ;;  %v2244_v58 = vpack.c.bf16 %v1387_v26, %v1386_v50 }
 0x5e0   : > { %v2698_v57 = vpop.eup %2697 }
 0x5e1   : > { %1816 = vst [vmem:[%s3834_s29 + $0x50] sm:$0xff] %v1800_v45  ;;  %v1775_v28 = vmul.f32 0.6931472, %v2698_v57  ;;  %v1755_v4 = vpop.xlane.xlu1 %1754  ;;  %2263 = vst [vmem:[%s3828_s26 + $0x30] sm:$0xff] %v2244_v58  }
 0x5e2   : > { %2703 = vlog2.f32 %v1755_v4  ;;  %v1388_v14 = vpop.trf.xlu0 }
 0x5e3   : > { %v1798_v8 = vsub.f32 %v3747_v21, %v1775_v28 }
 0x5e4   : > { %v2700_v33 = vpop.eup %2699 }
 0x5e5   : > { %1814 = vst [vmem:[%s3834_s29 + $0x40] sm:$0xff] %v1798_v8  ;;  %v1781_v9 = vmul.f32 0.6931472, %v2700_v33  ;;  %v1751_v7 = vpop.xlane.xlu1 %1750 }
 0x5e6   : > { %2705 = vlog2.f32 %v1751_v7  ;;  %v1389_v39 = vpop.trf.xlu0 }
 0x5e7   : > { %v1801_v12 = vsub.f32 %v3750_v43, %v1781_v9  ;;  %v2249_v15 = vpack.c.bf16 %v1389_v39, %v1388_v14 }
 0x5e8   : > { %v2702_v21 = vpop.eup %2701 }
 0x5e9   : > { %1817 = vst [vmem:[%s3834_s29 + $0x58] sm:$0xff] %v1801_v12  ;;  %v1777_v10 = vmul.f32 0.6931472, %v2702_v21  ;;  %v1753_v46 = vpop.xlane.xlu1 %1752  ;;  %2264 = vst [vmem:[%s3828_s26 + $0x38] sm:$0xff] %v2249_v15  }
 0x5ea   : > { %2707 = vlog2.f32 %v1753_v46 }
 0x5eb   : > { %2866 = shalt.err (!%p2863_p10)
}
 0x5ec   : > { %s2867_s26 = scalar_lea.hbm %s3869_s23, 1024  ;;  %s2871_s12 = scalar_lea.hbm %s4001_s27, 3072 }
 0x5ed   : > { %p2868_p8 = scmp.ne.s32.totalorder %s3869_s23, %s2867_s26  ;;  %p2872_p0 = scmp.lt.u32.totalorder %s3869_s23, %s4001_s27 }
 0x5ee   : > { %p2873_p3 = scmp.lt.u32.totalorder %s2871_s12, %s2867_s26  ;;  %p2875_p11 = scmp.lt.u32.totalorder %s2867_s26, %s3869_s23 }
 0x5ef   : > { %p2869_p12 = pnand %p2868_p8, %p3190_p5 }
 0x5f0   : > { %p2874_p7 = por %p2873_p3, %p2872_p0 }
 0x5f1   : > { %p2870_p6 = pneg %p2869_p12 }
 0x5f2   : > { %p2876_p1 = por %p2875_p11, %p2874_p7 }
 0x5f4   : > { %p2877_p2 = pnand %p2876_p1, %p2870_p6 }
 0x5f6   : > { %2880 = shalt.err (!%p2877_p2)
}
 0x5f7   : > { %s2971_s28 = smov 192   ;;  %s4002_s13 = smov 64   ;;  %v1799_v43 = vsub.f32 %v3755_v62, %v1777_v10  ;;  %v2704_v41 = vpop.eup %2703  ;;  %v1757_v35 = vpop.xlane.xlu1 %1756 }
 0x5f8   : > { %2440 = dma.vmem_to_hbm [thread:$0]  (%p3190_p5), %s3863_s10, 1024, %s3869_s23, %s3873_s25, %s4002_s13, %s2971_s28, %s2969_s16   ;;  %v1787_v53 = vmul.f32 0.6931472, %v2704_v41  ;;  %2709 = vlog2.f32 %v1757_v35  ;;  %v2706_v61 = vpop.eup %2705 }
 0x5f9   : > { %1815 = vst [vmem:[%s3834_s29 + $0x48] sm:$0xff] %v1799_v43  ;;  %v1783_v40 = vmul.f32 0.6931472, %v2706_v61  ;;  %v2708_v31 = vpop.eup %2707  ;;  %s2170_s16 = sshll.u32 %s3056_s21, 11  ;;  %s1877_s10 = sshll.u32 %s3834_s29, 4  ;;  %s3914_s10 = int_to_ptr.vmem [resolvable:$true] %s1877_s10 }
 0x5fa   : > { %v1804_v30 = vsub.f32 %v3759_v6, %v1787_v53  ;;  %v1785_v42 = vmul.f32 0.6931472, %v2708_v31  ;;  %s4003_s15 = sld [smem:[#allocation23_spill]]  ;;  %s2881_s12 = scalar_lea.vmem %s3914_s10, 2048 }
 0x5fb   : > { %v1802_v23 = vsub.f32 %v3764_v36, %v1783_v40  ;;  %p2882_p4 = scmp.ne.s32.totalorder %s3914_s10, %s2881_s12  ;;  %s2972_s21 = smov [#allocation13]  }
 0x5fc   : > { %1820 = vst [vmem:[%s3834_s29 + $0x70] sm:$0xff] %v1804_v30  ;;  %v1803_v62 = vsub.f32 %v3773_v37, %v1785_v42  ;;  %s2885_s9 = sshll.u32 %s2972_s21, 4  ;;  %s2886_s9 = int_to_ptr.vmem [resolvable:$false] %s2885_s9 }
 0x5fd   : > { %1818 = vst [vmem:[%s3834_s29 + $0x60] sm:$0xff] %v1802_v23  ;;  %p2883_p9 = pnand %p2882_p4, %p3190_p5  ;;  %s2887_s30 = scalar_lea.vmem %s2886_s9, 4096 }
 0x5fe   : > { %1819 = vst [vmem:[%s3834_s29 + $0x68] sm:$0xff] %v1803_v62  ;;  %p2888_p10 = scmp.lt.s32.totalorder %s3914_s10, %s2886_s9  ;;  %p2889_p8 = scmp.lt.s32.totalorder %s2887_s30, %s2881_s12 }
 0x5ff   : > { %p2884_p13 = pneg %p2883_p9 }
 0x600   : > { %s3912_s22 = scalar_lea.hbm %s4003_s15, %s2170_s16  ;;  %p2890_p12 = por %p2889_p8, %p2888_p10 }
 0x602   : > { %v2710_v34 = vpop.eup %2709  ;;  %p2891_p6 = pnand %p2890_p12, %p2884_p13 }
 0x603   : > { %v1789_v48 = vmul.f32 0.6931472, %v2710_v34 }
 0x605   : > { %v1805_v6 = vsub.f32 %v3780_v25, %v1789_v48 }
 0x607   : > { %1821 = vst [vmem:[%s3834_s29 + $0x78] sm:$0xff] %v1805_v6 }
 0x608   : > { %2894 = shalt.err (!%p2891_p6)
}
 0x609   : > { %s2895_s29 = scalar_lea.hbm %s3912_s22, 2048  ;;  %s2899_s16 = scalar_lea.hbm %s4003_s15, 6144 }
 0x60a   : > { %p2896_p0 = scmp.ne.s32.totalorder %s3912_s22, %s2895_s29  ;;  %p2900_p11 = scmp.lt.u32.totalorder %s3912_s22, %s4003_s15 }
 0x60b   : > { %p2901_p1 = scmp.lt.u32.totalorder %s2899_s16, %s2895_s29  ;;  %p2903_p4 = scmp.lt.u32.totalorder %s2895_s29, %s3912_s22 }
 0x60c   : > { %p2897_p3 = pnand %p2896_p0, %p3190_p5 }
 0x60d   : > { %p2902_p2 = por %p2901_p1, %p2900_p11 }
 0x60e   : > { %p2898_p7 = pneg %p2897_p3 }
 0x60f   : > { %p2904_p9 = por %p2903_p4, %p2902_p2 }
 0x611   : > { %p2905_p13 = pnand %p2904_p9, %p2898_p7 }
 0x613   : > { %2908 = shalt.err (!%p2905_p13)
}
 0x614   : > { %s2973_s12 = smov 128   ;;  %s2974_s21 = smov 8  }
 0x615   : > { %2441 = dma.vmem_to_hbm [thread:$0]  (%p3190_p5), %s3914_s10, 2048, %s3912_s22, %s3873_s25, %s2973_s12, %s2973_s12, %s2974_s21  }
 0x616 PF: > { %s4004_s9 = sld [smem:[#allocation19_spill]]  ;;  %s4005_s30 = sld [smem:[#allocation20_spill]] }
 0x617   : > { %p2476_p10 = scmp.ge.s32.totalorder %s2959_s20, 2 }
 0x61c   : > { %s1892_s28 = sand.u32 1, %s4004_s9   ;;  %p4006_p8 = scmp.ne.s32.totalorder %s4005_s30, 0 }
 0x61d   : > { %s1893_s29 = scalar_lea.sflag [#allocation4], %s1892_s28 }
 0x61e   : > { %p2460_p12 = pnand %p2476_p10, %p4006_p8 }
 0x620   : > { %2938 = dma.done.wait (!%p2460_p12), %s1893_s29, 1024  }
 0x621   : > { %2940 = vsyncadd (!%p2460_p12), %s1893_s29, 4294966272  ;;  %s4007_s13 = sadd.s32 4294967294, %s2959_s20  }
 0x622   : > { %s1901_s16 = sand.u32 1, %s4007_s13  }
 0x623   : > { %s1902_s23 = scalar_lea.sflag [#allocation12], %s1901_s16 }
 0x624   : > { %2942 = dma.done.wait (!%p2460_p12), %s1902_s23, 3072  }
 0x625   : > { %2944 = vsyncadd (!%p2460_p12), %s1902_s23, 4294964224  ;;  %p30_p5 = scmp.ge.s32.totalorder %s3176_s24, 5   ;;  %s4008_s17 = smov %s2951_s18 }
 0x626   : > { %s4009_s18 = smov %s2955_s19  ;;  %s4010_s19 = smov %s3186_s11 }
 0x627   : > { %s4011_s20 = smov %s3176_s24  ;;  %32 = sbr.rel (!%p30_p5) target bundleno = 13 (0xd), region = 145 }
 0x62e   :  { %1916 = vsyncpa [#allocation3], 1 }
 0x62f   :  { %1918 = vsyncpa [#allocation3 + $0x1], 1 }
 0x630   :  { %1919 = vsyncpa [#allocation6], 1 }
 0x631   :  { %1920 = vsyncpa [#allocation9], 1 }
 0x632   :  { %1921 = vsyncpa [#allocation4], 1 }
 0x633   :  { %1923 = vsyncpa [#allocation4 + $0x1], 1 }
 0x634   :  { %1924 = vsyncpa [#allocation12], 1 }
 0x635   :  { %1926 = vsyncpa [#allocation12 + $0x1], 1 }

</bundles_post_ra>
